<compile_context>
chip_gen: v5e
topology: v5e:2x2
jax: 0.10.0
libtpu: 0.0.40
codegen_flags: <defaults>
</compile_context>

<pallas_src>
import functools

import jax
import jax.numpy as jnp
from jax.experimental import pallas as pl
from jax.experimental.pallas import tpu as pltpu

LN_EPS = 1e-5  # PyTorch nn.LayerNorm default


def _round_up(x, m):
    return (x + m - 1) // m * m


def _conv1d_block_kernel(x_ref, w_ref, p_ref, o_ref, *, n_taps, l_out_pad):
    # x_ref: (TB, G, D)             phase-folded input, D = stride * C_in
    # w_ref: (n_taps, D, C_out)     folded conv weight (zero-padded phantom taps)
    # p_ref: (8, C_out)             row 0 = conv bias, 1 = LN gamma, 2 = LN beta
    # o_ref: (TB, C_out, L_out_pad) output block, NCL orientation, lane-dense
    tb, _, d = x_ref.shape
    c_out = o_ref.shape[1]
    m = tb * l_out_pad

    x = x_ref[...]                                              # (TB, G, D)

    # Strided conv == n_taps accumulated stride-1 matmuls over shifted row windows.
    # One slab-wide shifted slice + one (M, D) x (D, C_out) MXU matmul per tap.
    acc = None
    for t in range(n_taps):                                     # static unroll (tiny)
        xt = x[:, t:t + l_out_pad, :].reshape(m, d)
        r = jnp.dot(xt, w_ref[t], preferred_element_type=jnp.float32)
        acc = r if acc is None else acc + r                     # (M, C_out) f32

    bias = p_ref[0:1, :]
    gamma = p_ref[1:2, :]
    beta = p_ref[2:3, :]

    y = jnp.maximum(acc + bias, 0.0)                            # conv bias + ReLU
    # Dropout has p = 0.0 -> identity, nothing to emit.

    # LayerNorm over channels, single-pass statistics (lane reductions).
    inv_c = 1.0 / c_out
    mean = jnp.sum(y, axis=-1, keepdims=True) * inv_c
    ex2 = jnp.sum(y * y, axis=-1, keepdims=True) * inv_c
    var = ex2 - mean * mean
    y = (y - mean) * jax.lax.rsqrt(var + LN_EPS)
    y = y * gamma + beta                                        # (M, C_out)

    # One NLC -> NCL transpose and one lane-dense store per grid step.
    y = y.reshape(tb, l_out_pad, c_out)
    o_ref[...] = jnp.transpose(y, (0, 2, 1)).astype(o_ref.dtype)


def _pick_block_batch(batch, bytes_per_elem):
    # Whole batch in <=4 grid steps (amortizes the ~0.35us/step overhead; keeps the
    # grid even, which maps nicely onto v7x's 2 TensorCores), capped so the
    # double-buffered blocks stay well inside scoped VMEM on every generation.
    budget = 12 * 1024 * 1024
    cap = max(1, budget // max(1, bytes_per_elem))
    if batch <= 4:
        return min(batch, cap)
    return max(1, min(pl.cdiv(batch, 4), cap))


def conv1d_block_forward(x, weight, bias, gamma, beta, *, stride,
                         block_batch=None, mxu_dtype=None):
    """x: (B, C_in, L). weight: (C_out, C_in, K). Returns (B, C_out, L_out).

    mxu_dtype: pass jnp.bfloat16 (any TPU gen, including v5e) to halve input DMA
    bytes; accumulation and all post-matmul (ReLU/LayerNorm) math stay float32.
    """
    # TODO(synk): norm_type='batch'/'none' and dropout>0 paths of the module are not
    # implemented; this kernel covers the default norm_type='layer', dropout=0.0.
    B, C_in, L = x.shape
    C_out, _, K = weight.shape
    L_out = (L - K) // stride + 1
    assert L_out > 0

    if mxu_dtype is None:
        mxu_dtype = x.dtype

    # --- phase-fold the strided conv into a stride-1 conv (no im2col in HBM) ---
    # Folded row g holds x[:, :, g*stride:(g+1)*stride] channels-last; the conv
    # becomes n_taps accumulated matmuls over contiguous shifted row windows.
    n_taps = (K - 1) // stride + 1
    L_out_pad = _round_up(L_out, 128)                  # lane-dense output blocks
    G = _round_up(max(pl.cdiv(L, stride), L_out_pad + n_taps - 1), 8)
    L_pad = G * stride
    D = stride * C_in

    bytes_per_elem = (G * D * jnp.dtype(mxu_dtype).itemsize
                      + C_out * L_out_pad * jnp.dtype(x.dtype).itemsize)
    TB = block_batch or _pick_block_batch(B, bytes_per_elem)
    n_blocks = pl.cdiv(B, TB)
    B_pad = n_blocks * TB

    x_nlc = jnp.transpose(x, (0, 2, 1)).astype(mxu_dtype)              # (B, L, C_in)
    x_nlc = jnp.pad(x_nlc, ((0, B_pad - B), (0, L_pad - L), (0, 0)))   # zero pad
    x_fold = x_nlc.reshape(B_pad, G, D)                                # free reshape

    # Folded weight: W[t, j*C_in + c, o] = weight[o, c, t*stride + j] (0 if tap >= K)
    K_pad = n_taps * stride
    w_pad = jnp.pad(weight, ((0, 0), (0, 0), (0, K_pad - K)))          # (C_out, C_in, K_pad)
    w_fold = jnp.transpose(w_pad, (2, 1, 0)).reshape(n_taps, D, C_out).astype(mxu_dtype)

    # conv bias / LN gamma / LN beta fused into one sublane-padded (8, C_out) block
    params = jnp.zeros((8, C_out), jnp.float32)
    params = params.at[0].set(bias.astype(jnp.float32))
    params = params.at[1].set(gamma.astype(jnp.float32))
    params = params.at[2].set(beta.astype(jnp.float32))

    kernel = functools.partial(_conv1d_block_kernel, n_taps=n_taps,
                               l_out_pad=L_out_pad)

    out = pl.pallas_call(
        kernel,
        out_shape=jax.ShapeDtypeStruct((B_pad, C_out, L_out_pad), x.dtype),
        grid_spec=pltpu.PrefetchScalarGridSpec(
            num_scalar_prefetch=0,
            grid=(n_blocks,),
            in_specs=[
                pl.BlockSpec((TB, G, D), lambda b: (b, 0, 0)),
                pl.BlockSpec((n_taps, D, C_out), lambda b: (0, 0, 0)),
                pl.BlockSpec((8, C_out), lambda b: (0, 0)),
            ],
            out_specs=pl.BlockSpec((TB, C_out, L_out_pad), lambda b: (b, 0, 0)),
        ),
        compiler_params=pltpu.CompilerParams(
            dimension_semantics=("parallel",),
            vmem_limit_bytes=48 * 1024 * 1024,
        ),
    )(x_fold, w_fold, params)

    return out[:B, :, :L_out]


def reference_forward(x, weight, bias, gamma, beta, *, stride):
    """Pure-JAX reference (sanity check)."""
    y = jax.lax.conv_general_dilated(
        x, weight, window_strides=(stride,), padding="VALID",
        dimension_numbers=("NCH", "OIH", "NCH"))
    y = y + bias[None, :, None]
    y = jnp.maximum(y, 0.0)
    y_t = jnp.swapaxes(y, -1, -2)
    mean = jnp.mean(y_t, axis=-1, keepdims=True)
    var = jnp.mean((y_t - mean) ** 2, axis=-1, keepdims=True)
    y_n = (y_t - mean) * jax.lax.rsqrt(var + LN_EPS)
    y_n = y_n * gamma + beta
    return jnp.swapaxes(y_n, -1, -2)


if __name__ == "__main__":
    # Small shapes consistent with the module (original script used (128, 16, 150)).
    # B=5 also exercises the batch-padding / tail-masking path (TB=2 -> B_pad=6).
    B, C_in, L = 5, 16, 32
    C_out, K, stride = 32, 3, 2

    key = jax.random.PRNGKey(0)
    kx, kw, kb, kg, kbt = jax.random.split(key, 5)
    x = jax.random.normal(kx, (B, C_in, L), dtype=jnp.float32)

    # Deterministic synthetic parameters (shapes from nn.Conv1d / nn.LayerNorm).
    fan_in = C_in * K
    weight = jax.random.normal(kw, (C_out, C_in, K), dtype=jnp.float32) / jnp.sqrt(fan_in)
    bias = 0.01 * jax.random.normal(kb, (C_out,), dtype=jnp.float32)
    gamma = 1.0 + 0.1 * jax.random.normal(kg, (C_out,), dtype=jnp.float32)  # LN weight
    beta = 0.05 * jax.random.normal(kbt, (C_out,), dtype=jnp.float32)       # LN bias

    out = conv1d_block_forward(x, weight, bias, gamma, beta, stride=stride)
    out = jax.block_until_ready(out)

    ref = reference_forward(x, weight, bias, gamma, beta, stride=stride)
    L_out = (L - K) // stride + 1
    assert out.shape == ref.shape == (B, C_out, L_out)
    assert jnp.allclose(out, ref, atol=2e-4, rtol=2e-4), "mismatch vs reference"

    print("KERNEL_OK")
</pallas_src>

<mosaic_0001>
module attributes {stable_mosaic.version = 11 : i64} {
  func.func @_conv1d_block_kernel(%arg0: i32, %arg1: memref<2x136x32xf32, #tpu.memory_space<vmem>>, %arg2: memref<2x32x32xf32, #tpu.memory_space<vmem>>, %arg3: memref<8x32xf32, #tpu.memory_space<vmem>>, %arg4: memref<2x32x128xf32, #tpu.memory_space<vmem>>) attributes {dimension_semantics = [#tpu.dimension_semantics<parallel>], iteration_bounds = array<i64: 3>, scalar_prefetch = 0 : i64, scratch_operands = 0 : i64, tpu.core_type = #tpu.core_type<tc>, window_params = [{transform_indices = @transform_0, window_bounds = array<i64: 2, 136, 32>}, {pipeline_mode = #tpu.pipeline_mode<synchronous>, transform_indices = @transform_1, window_bounds = array<i64: 2, 32, 32>}, {pipeline_mode = #tpu.pipeline_mode<synchronous>, transform_indices = @transform_2, window_bounds = array<i64: 8, 32>}, {transform_indices = @transform_3, window_bounds = array<i64: 2, 32, 128>}]} {
    %c0 = arith.constant 0 : index
    %c0_0 = arith.constant 0 : index
    %c0_1 = arith.constant 0 : index
    %0 = vector.load %arg1[%c0, %c0_0, %c0_1] : memref<2x136x32xf32, #tpu.memory_space<vmem>>, vector<2x136x32xf32>
    %1 = vector.extract_strided_slice %0 {offsets = [0, 0, 0], sizes = [2, 128, 32], strides = [1, 1, 1]} : vector<2x136x32xf32> to vector<2x128x32xf32>
    %2 = vector.shape_cast %1 : vector<2x128x32xf32> to vector<256x32xf32>
    %c0_2 = arith.constant 0 : index
    %c0_3 = arith.constant 0 : index
    %c0_4 = arith.constant 0 : index
    %3 = vector.load %arg2[%c0_2, %c0_3, %c0_4] : memref<2x32x32xf32, #tpu.memory_space<vmem>>, vector<1x32x32xf32>
    %4 = vector.shape_cast %3 : vector<1x32x32xf32> to vector<32x32xf32>
    %cst = arith.constant dense<0.000000e+00> : vector<256x32xf32>
    %5 = tpu.matmul %2, %4, %cst {dimension_numbers = #tpu.dot_dimension_numbers<[1], [0], [0], [1], [0, 0, 1, 1], [], []>} : vector<256x32xf32>, vector<32x32xf32>, vector<256x32xf32> -> vector<256x32xf32>
    %6 = vector.extract_strided_slice %0 {offsets = [0, 1, 0], sizes = [2, 128, 32], strides = [1, 1, 1]} : vector<2x136x32xf32> to vector<2x128x32xf32>
    %7 = vector.shape_cast %6 : vector<2x128x32xf32> to vector<256x32xf32>
    %c1 = arith.constant 1 : index
    %c0_5 = arith.constant 0 : index
    %c0_6 = arith.constant 0 : index
    %8 = vector.load %arg2[%c1, %c0_5, %c0_6] : memref<2x32x32xf32, #tpu.memory_space<vmem>>, vector<1x32x32xf32>
    %9 = vector.shape_cast %8 : vector<1x32x32xf32> to vector<32x32xf32>
    %cst_7 = arith.constant dense<0.000000e+00> : vector<256x32xf32>
    %10 = tpu.matmul %7, %9, %cst_7 {dimension_numbers = #tpu.dot_dimension_numbers<[1], [0], [0], [1], [0, 0, 1, 1], [], []>} : vector<256x32xf32>, vector<32x32xf32>, vector<256x32xf32> -> vector<256x32xf32>
    %11 = arith.addf %5, %10 : vector<256x32xf32>
    %c0_8 = arith.constant 0 : index
    %c0_9 = arith.constant 0 : index
    %12 = vector.load %arg3[%c0_8, %c0_9] : memref<8x32xf32, #tpu.memory_space<vmem>>, vector<1x32xf32>
    %c1_10 = arith.constant 1 : index
    %c0_11 = arith.constant 0 : index
    %13 = vector.load %arg3[%c1_10, %c0_11] : memref<8x32xf32, #tpu.memory_space<vmem>>, vector<1x32xf32>
    %c2 = arith.constant 2 : index
    %c0_12 = arith.constant 0 : index
    %14 = vector.load %arg3[%c2, %c0_12] : memref<8x32xf32, #tpu.memory_space<vmem>>, vector<1x32xf32>
    %15 = vector.broadcast %12 : vector<1x32xf32> to vector<256x32xf32>
    %16 = arith.addf %11, %15 : vector<256x32xf32>
    %cst_13 = arith.constant 0.000000e+00 : f32
    %17 = vector.broadcast %cst_13 : f32 to vector<256x32xf32>
    %18 = arith.maximumf %16, %17 : vector<256x32xf32>
    %cst_14 = arith.constant dense<0.000000e+00> : vector<256xf32>
    %19 = vector.multi_reduction <add>, %18, %cst_14 [1] : vector<256x32xf32> to vector<256xf32>
    %20 = vector.shape_cast %19 : vector<256xf32> to vector<256x1xf32>
    %cst_15 = arith.constant 3.125000e-02 : f32
    %21 = vector.broadcast %cst_15 : f32 to vector<256x1xf32>
    %22 = arith.mulf %20, %21 : vector<256x1xf32>
    %23 = arith.mulf %18, %18 : vector<256x32xf32>
    %cst_16 = arith.constant dense<0.000000e+00> : vector<256xf32>
    %24 = vector.multi_reduction <add>, %23, %cst_16 [1] : vector<256x32xf32> to vector<256xf32>
    %25 = vector.shape_cast %24 : vector<256xf32> to vector<256x1xf32>
    %cst_17 = arith.constant 3.125000e-02 : f32
    %26 = vector.broadcast %cst_17 : f32 to vector<256x1xf32>
    %27 = arith.mulf %25, %26 : vector<256x1xf32>
    %28 = arith.mulf %22, %22 : vector<256x1xf32>
    %29 = arith.subf %27, %28 : vector<256x1xf32>
    %30 = vector.broadcast %22 : vector<256x1xf32> to vector<256x32xf32>
    %31 = arith.subf %18, %30 : vector<256x32xf32>
    %cst_18 = arith.constant 9.99999974E-6 : f32
    %32 = vector.broadcast %cst_18 : f32 to vector<256x1xf32>
    %33 = arith.addf %29, %32 : vector<256x1xf32>
    %34 = math.rsqrt %33 : vector<256x1xf32>
    %35 = vector.broadcast %34 : vector<256x1xf32> to vector<256x32xf32>
    %36 = arith.mulf %31, %35 : vector<256x32xf32>
    %37 = vector.broadcast %13 : vector<1x32xf32> to vector<256x32xf32>
    %38 = arith.mulf %36, %37 : vector<256x32xf32>
    %39 = vector.broadcast %14 : vector<1x32xf32> to vector<256x32xf32>
    %40 = arith.addf %38, %39 : vector<256x32xf32>
    %41 = vector.shape_cast %40 : vector<256x32xf32> to vector<2x128x32xf32>
    %42 = tpu.transpose %41, [0, 2, 1] : vector<2x128x32xf32> -> vector<2x32x128xf32>
    %c0_19 = arith.constant 0 : index
    %c0_20 = arith.constant 0 : index
    %c0_21 = arith.constant 0 : index
    %43 = vector.load %arg4[%c0_19, %c0_20, %c0_21] : memref<2x32x128xf32, #tpu.memory_space<vmem>>, vector<2x32x128xf32>
    tpu.vector_store %arg4[%c0_19, %c0_20, %c0_21], %42 {strides = array<i32>} : memref<2x32x128xf32, #tpu.memory_space<vmem>>, vector<2x32x128xf32>,
    return
  }
  func.func @transform_0(%arg0: i32) -> (i32, i32, i32) {
    %c0_i32 = arith.constant 0 : i32
    %c0_i32_0 = arith.constant 0 : i32
    %c0_i32_1 = arith.constant 0 : i32
    return %arg0, %c0_i32, %c0_i32_0 : i32, i32, i32
  }
  func.func @transform_1(%arg0: i32) -> (i32, i32, i32) {
    %c0_i32 = arith.constant 0 : i32
    %c0_i32_0 = arith.constant 0 : i32
    %c0_i32_1 = arith.constant 0 : i32
    %c0_i32_2 = arith.constant 0 : i32
    return %c0_i32, %c0_i32_0, %c0_i32_1 : i32, i32, i32
  }
  func.func @transform_2(%arg0: i32) -> (i32, i32) {
    %c0_i32 = arith.constant 0 : i32
    %c0_i32_0 = arith.constant 0 : i32
    %c0_i32_1 = arith.constant 0 : i32
    return %c0_i32, %c0_i32_0 : i32, i32
  }
  func.func @transform_3(%arg0: i32) -> (i32, i32, i32) {
    %c0_i32 = arith.constant 0 : i32
    %c0_i32_0 = arith.constant 0 : i32
    %c0_i32_1 = arith.constant 0 : i32
    return %arg0, %c0_i32, %c0_i32_0 : i32, i32, i32
  }
}

</mosaic_0001>

<bundles_post_ra>
// kernel: tpu_custom_call.1
= control target key start
LH: loop header
LB: loop body
LE: loop exit
PB: predicated region body
PF: predicated region fallthrough
CT: control target
= control target key end

     0   :  { %8 = vsyncpa [#allocation3], 0  ;;  %s3513_s0 = inlined_call_operand.vmem [shape: f32[6,136,32], index: 0, kind: input, shape index: {}]   ;;  %s3514_s1 = inlined_call_operand.vmem [shape: f32[2,32,32], index: 1, kind: input, shape index: {}]   ;;  %s3515_s2 = inlined_call_operand.vmem [shape: f32[8,32], index: 2, kind: input, shape index: {}]   ;;  %s3516_s3 = inlined_call_operand.hbm [shape: f32[6,32,128], index: 3, kind: output, shape index: {}]  }
   0x1   :  { %10 = vsyncpa [#allocation3 + $0x1], 0  ;;  %s2015_s12 = smov 0   ;;  %s2017_s13 = smov 0  }
   0x2   :  { %s2019_s14 = smov 0   ;;  %s2021_s15 = smov 0  }
   0x3 LB: > { %s2036_s16 = sadd.s32 4294967295, %s1991_s15   ;;  %s1727_s17 = sadd.s32 4294967294, %s1991_s15   ;;  %s1991_s15 = sphi %s2021_s15, %s3640_s15   ;;  %s1987_s14 = sphi %s2019_s14, %s3639_s14   ;;  %s1983_s13 = sphi %s2017_s13, %s3638_s13   ;;  %s1979_s12 = sphi %s2015_s12, %s3637_s12  }
   0x4   : > { %s2040_s18 = sadd.s32 1, %s1991_s15   ;;  %s91_s19 = sadd.s32 1, %s1987_s14 }
   0x5   : > { %s88_s20 = ssub.s32 %s1991_s15, %s2040_s18  ;;  %p101_p0 = scmp.ne.s32.totalorder %s1987_s14, %s1983_s13 }
   0x6   : > { %p89_p1 = scmp.eq.s32.totalorder %s88_s20, 0  ;;  %p102_p2 = scmp.eq.s32.totalorder %s2036_s16, 2 }
   0x7   : > { %p107_p3 = scmp.ne.s32.totalorder %s1983_s13, %s1979_s12  ;;  %p108_p4 = scmp.eq.s32.totalorder %s1727_s17, 2 }
   0x8   : > { %s2051_s21 = scalar_select %p89_p1, %s1987_s14, %s91_s19  }
   0x9   : > { %p2053_p5 = por %p102_p2, %p101_p0  ;;  %p2057_p6 = por %p108_p4, %p107_p3 }
   0xa   : > { %p1730_p7 = scmp.ge.s32.totalorder %s1991_s15, 1  ;;  %p142_p8 = scmp.lt.s32.totalorder %s1991_s15, 4 }
   0xc   : > { %p143_p9 = pnand %p1730_p7, %p142_p8 }
   0xe   : > { %146 = sbr.rel (%p143_p9) target bundleno = 582 (0x246), region = 32 }
  0x13   : > { %v1737_v0 = vld [vmem:[%s3514_s1 + $0x38] sm:$0xff]  ;;  %v1736_v2 = vld [vmem:[%s3514_s1 + $0x30] sm:$0xff]  ;;  %s1732_s30 = sshll.u32 %s2036_s16, 1  ;;  %v1735_v4 = vld [vmem:[%s3514_s1 + $0x28] sm:$0xff]  ;;  %vm319_vm0 = vcmask 261120   ;;  %vm247_vm1 = vcmask 1046528  }
  0x14   : > { %v212_v1 = vld [vmem:[%s3514_s1 + $0x18] sm:$0xff]  ;;  %396 = vmatpush.msra.mxu0 %v1737_v0  ;;  %1810 = vmatpush.msra.mxu2 %v1737_v0  ;;  %v211_v3 = vld [vmem:[%s3514_s1 + $0x10] sm:$0xff]  ;;  %p168_p10 = scmp.lt.s32.totalorder %s1732_s30, 5  ;;  %v210_v5 = vld [vmem:[%s3514_s1 + $0x8] sm:$0xff]  ;;  %s164_s10 = sand.u32 1, %s1983_s13  }
  0x15   : > { %573 = vmatpush.msra.mxu1 %v212_v1  ;;  %1814 = vmatpush.msra.mxu3 %v212_v1  ;;  %v1734_v6 = vld [vmem:[%s3514_s1 + $0x20] sm:$0xff]  ;;  %s1731_s11 = sshll.u32 %s164_s10, 6  ;;  %s1809_s19 = sshll.u32 %s2036_s16, 6 }
  0x16   : > { %397 = vmatpush.msra.mxu0 %v1736_v2  ;;  %1811 = vmatpush.msra.mxu2 %v1736_v2  ;;  %s3642_s30 = smov (!%p168_p10, %s1732_s30), 5  ;;  %v209_v7 = vld [vmem:[%s3514_s1] sm:$0xff]  ;;  %s166_s17 = scalar_lea.vmem [#allocation2], %s1731_s11 }
  0x17   : > { %574 = vmatpush.msra.mxu1 %v211_v3  ;;  %1815 = vmatpush.msra.mxu3 %v211_v3  ;;  %s1818_s20 = smul.u32 136, %s3642_s30  ;;  %s1661_s25 = scalar_lea.hbm %s3516_s3, %s1809_s19 }
  0x18   : > { %398 = vmatpush.msra.mxu0 %v1735_v4  ;;  %1812 = vmatpush.msra.mxu2 %v1735_v4  ;;  %s1664_s27 = sshll.u32 %s1661_s25, 4  ;;  %s1649_s28 = scalar_lea.sflag [#allocation3], %s164_s10  ;;  %s1665_s27 = int_to_ptr.hbm [resolvable:$true] %s1664_s27 }
  0x19   : > { %575 = vmatpush.msra.mxu1 %v210_v5  ;;  %1816 = vmatpush.msra.mxu3 %v210_v5  ;;  %s2091_s26 = scalar_lea.vmem %s3513_s0, %s1818_s20  ;;  %s1943_s29 = sshra.s32 %s1665_s27, 4  ;;  %s1944_s29 = int_to_ptr.hbm [resolvable:$true] %s1943_s29 }
  0x1a   : > { %399 = vmatpush.msra.mxu0 %v1734_v6  ;;  %1813 = vmatpush.msra.mxu2 %v1734_v6  ;;  %v175_v8 = vld [vmem:[%s2091_s26] sm:$0xff]  ;;  %v176_v9 = vld [vmem:[%s2091_s26 + $0x8] sm:$0xff]  ;;  %v193_v13 = vld [vmem:[%s2091_s26 + $0x90] sm:$0xff]  ;;  %s1945_s30 = scalar_lea.hbm %s1944_s29, 64  ;;  %s1949_s5 = scalar_lea.hbm %s3516_s3, 192 }
  0x1b   : > { %576 = vmatpush.msra.mxu1 %v209_v7  ;;  %1817 = vmatpush.msra.mxu3 %v209_v7  ;;  %v192_v10 = vld [vmem:[%s2091_s26 + $0x88] sm:$0xff]  ;;  %v248_v11 = vrot.slane %v175_v8, 1  ;;  %v249_v12 = vrot.slane %v176_v9, 1  ;;  %v282_v15 = vrot.slane %v193_v13, 1  ;;  %v177_v16 = vld [vmem:[%s2091_s26 + $0x10] sm:$0xff]  ;;  %v194_v18 = vld [vmem:[%s2091_s26 + $0x98] sm:$0xff]  ;;  %p1946_p11 = scmp.ne.s32.totalorder %s1944_s29, %s1945_s30  ;;  %p1950_p0 = scmp.lt.s32.totalorder %s1944_s29, %s3516_s3 }
  0x1c   : > { %v281_v14 = vrot.slane %v192_v10, 1  ;;  %1770 = vmatmul.msk.f32.vlgmr.msra.gmra.mxu1 %vm319_vm0, %v175_v8  ;;  %1786 = vmatmul.msk.f32.vlgmr.msra.gmra.mxu3 %vm319_vm0, %v192_v10  ;;  %v251_v20 = vrot.slane %v177_v16, 1  ;;  %v284_v21 = vrot.slane %v194_v18, 1  ;;  %v178_v24 = vld [vmem:[%s2091_s26 + $0x18] sm:$0xff]  ;;  %v195_v25 = vld [vmem:[%s2091_s26 + $0xa0] sm:$0xff]  ;;  %v196_v31 = vld [vmem:[%s2091_s26 + $0xa8] sm:$0xff]  ;;  %p1951_p1 = scmp.lt.s32.totalorder %s1949_s5, %s1945_s30 }
  0x1d   : > { %v250_v17 = vsel %vm247_vm1, %v248_v11, %v249_v12  ;;  %v253_v26 = vrot.slane %v178_v24, 1  ;;  %v286_v27 = vrot.slane %v195_v25, 1  ;;  %v179_v30 = vld [vmem:[%s2091_s26 + $0x20] sm:$0xff]  ;;  %v288_v33 = vrot.slane %v196_v31, 1  ;;  %v180_v36 = vld [vmem:[%s2091_s26 + $0x28] sm:$0xff]  ;;  %v197_v37 = vld [vmem:[%s2091_s26 + $0xb0] sm:$0xff]  ;;  %p1947_p12 = pnand %p1946_p11, %p2053_p5 }
  0x1e   : > { %1738 = vmatmul.msk.f32.vlgmr.msra.gmra.mxu0 %vm319_vm0, %v250_v17  ;;  %v283_v19 = vsel %vm247_vm1, %v281_v14, %v282_v15  ;;  %v252_v22 = vsel %vm247_vm1, %v249_v12, %v251_v20  ;;  %v285_v23 = vsel %vm247_vm1, %v282_v15, %v284_v21  ;;  %v255_v32 = vrot.slane %v179_v30, 1  ;;  %v181_v42 = vld [vmem:[%s2091_s26 + $0x30] sm:$0xff]  ;;  %v198_v43 = vld [vmem:[%s2091_s26 + $0xb8] sm:$0xff]  ;;  %v199_v49 = vld [vmem:[%s2091_s26 + $0xc0] sm:$0xff]  ;;  %p1952_p2 = por %p1951_p1, %p1950_p0 }
  0x1f   : > { %1754 = vmatmul.msk.f32.vlgmr.msra.gmra.mxu2 %vm319_vm0, %v283_v19  ;;  %v254_v28 = vsel %vm247_vm1, %v251_v20, %v253_v26  ;;  %v287_v29 = vsel %vm247_vm1, %v284_v21, %v286_v27  ;;  %v289_v35 = vsel %vm247_vm1, %v286_v27, %v288_v33  ;;  %v257_v38 = vrot.slane %v180_v36, 1  ;;  %v182_v48 = vld [vmem:[%s2091_s26 + $0x38] sm:$0xff]  ;;  %v183_v54 = vld [vmem:[%s2091_s26 + $0x40] sm:$0xff]  ;;  %v200_v55 = vld [vmem:[%s2091_s26 + $0xc8] sm:$0xff]  ;;  %p1948_p13 = pneg %p1947_p12 }
  0x20   : > { %v256_v34 = vsel %vm247_vm1, %v253_v26, %v255_v32  ;;  %v290_v39 = vrot.slane %v197_v37, 1  ;;  %v259_v44 = vrot.slane %v181_v42, 1  ;;  %v292_v45 = vrot.slane %v198_v43, 1  ;;  %v184_v60 = vld [vmem:[%s2091_s26 + $0x48] sm:$0xff]  ;;  %v201_v61 = vld [vmem:[%s2091_s26 + $0xd0] sm:$0xff]  ;;  %v202_v3 = vld [vmem:[%s2091_s26 + $0xd8] sm:$0xff] }
  0x21   : > { %v258_v40 = vsel %vm247_vm1, %v255_v32, %v257_v38  ;;  %v261_v50 = vrot.slane %v182_v48, 1  ;;  %v294_v51 = vrot.slane %v199_v49, 1  ;;  %v263_v56 = vrot.slane %v183_v54, 1  ;;  %v185_v2 = vld [vmem:[%s2091_s26 + $0x50] sm:$0xff]  ;;  %v186_v8 = vld [vmem:[%s2091_s26 + $0x58] sm:$0xff]  ;;  %v187_v14 = vld [vmem:[%s2091_s26 + $0x60] sm:$0xff]  ;;  %p1953_p3 = pnand %p1952_p2, %p1948_p13 }
  0x22   : > { %v291_v41 = vsel %vm247_vm1, %v288_v33, %v290_v39  ;;  %v260_v46 = vsel %vm247_vm1, %v257_v38, %v259_v44  ;;  %v293_v47 = vsel %vm247_vm1, %v290_v39, %v292_v45  ;;  %v296_v57 = vrot.slane %v200_v55, 1  ;;  %v204_v15 = vld [vmem:[%s2091_s26 + $0xe8] sm:$0xff]  ;;  %v205_v21 = vld [vmem:[%s2091_s26 + $0xf0] sm:$0xff]  ;;  %v206_v26 = vld [vmem:[%s2091_s26 + $0xf8] sm:$0xff] }
  0x23   : > { %v262_v52 = vsel %vm247_vm1, %v259_v44, %v261_v50  ;;  %v295_v53 = vsel %vm247_vm1, %v292_v45, %v294_v51  ;;  %v264_v58 = vsel %vm247_vm1, %v261_v50, %v263_v56  ;;  %v265_v62 = vrot.slane %v184_v60, 1  ;;  %v188_v20 = vld [vmem:[%s2091_s26 + $0x68] sm:$0xff]  ;;  %v207_v32 = vld [vmem:[%s2091_s26 + $0x100] sm:$0xff] }
  0x24   : > { %1771 = vmatmul.msk.f32.gmra.mxu1 %vm319_vm0, %v176_v9  ;;  %1787 = vmatmul.msk.f32.gmra.mxu3 %vm319_vm0, %v193_v13  ;;  %v297_v59 = vsel %vm247_vm1, %v294_v51, %v296_v57  ;;  %v298_v63 = vrot.slane %v201_v61, 1  ;;  %v267_v4 = vrot.slane %v185_v2, 1  ;;  %v300_v5 = vrot.slane %v202_v3, 1  ;;  %v203_v9 = vld [vmem:[%s2091_s26 + $0xe0] sm:$0xff]  ;;  %v208_v44 = vld [vmem:[%s2091_s26 + $0x108] sm:$0xff] }
  0x25   : > { %v266_v0 = vsel %vm247_vm1, %v263_v56, %v265_v62  ;;  %v269_v10 = vrot.slane %v186_v8, 1  ;;  %v302_v11 = vrot.slane %v203_v9, 1  ;;  %v304_v17 = vrot.slane %v204_v15, 1  ;;  %v2220_v39 = vld [vmem:[%s3515_s2] ss:$0 sm:$0xff] }
  0x26   : > { %1739 = vmatmul.msk.f32.gmra.mxu0 %vm319_vm0, %v252_v22  ;;  %v299_v1 = vsel %vm247_vm1, %v296_v57, %v298_v63  ;;  %v268_v6 = vsel %vm247_vm1, %v265_v62, %v267_v4  ;;  %v301_v7 = vsel %vm247_vm1, %v298_v63, %v300_v5  ;;  %v273_v22 = vrot.slane %v188_v20, 1 }
  0x27   : > { %1755 = vmatmul.msk.f32.gmra.mxu2 %vm319_vm0, %v285_v23  ;;  %v270_v12 = vsel %vm247_vm1, %v267_v4, %v269_v10  ;;  %v303_v13 = vsel %vm247_vm1, %v300_v5, %v302_v11  ;;  %v305_v19 = vsel %vm247_vm1, %v302_v11, %v304_v17  ;;  %v306_v23 = vrot.slane %v205_v21, 1 }
  0x28   : > { %v308_v27 = vrot.slane %v206_v26, 1  ;;  %v310_v33 = vrot.slane %v207_v32, 1  ;;  %v312_v45 = vrot.slane %v208_v44, 1 }
  0x2c   : > { %1772 = vmatmul.msk.f32.gmra.mxu1 %vm319_vm0, %v177_v16  ;;  %1788 = vmatmul.msk.f32.gmra.mxu3 %vm319_vm0, %v194_v18  ;;  %v271_v16 = vrot.slane %v187_v14, 1 }
  0x2e   : > { %1740 = vmatmul.msk.f32.gmra.mxu0 %vm319_vm0, %v254_v28  ;;  %v272_v18 = vsel %vm247_vm1, %v269_v10, %v271_v16  ;;  %v309_v28 = vsel %vm247_vm1, %v306_v23, %v308_v27 }
  0x2f   : > { %1756 = vmatmul.msk.f32.gmra.mxu2 %vm319_vm0, %v287_v29  ;;  %v189_v29 = vld [vmem:[%s2091_s26 + $0x70] sm:$0xff] }
  0x34   : > { %1773 = vmatmul.msk.f32.gmra.mxu1 %vm319_vm0, %v178_v24  ;;  %1789 = vmatmul.msk.f32.gmra.mxu3 %vm319_vm0, %v195_v25  ;;  %v274_v24 = vsel %vm247_vm1, %v271_v16, %v273_v22  ;;  %v307_v25 = vsel %vm247_vm1, %v304_v17, %v306_v23 }
  0x36   : > { %1741 = vmatmul.msk.f32.gmra.mxu0 %vm319_vm0, %v256_v34  ;;  %v311_v34 = vsel %vm247_vm1, %v308_v27, %v310_v33 }
  0x37   : > { %1757 = vmatmul.msk.f32.gmra.mxu2 %vm319_vm0, %v289_v35  ;;  %v190_v35 = vld [vmem:[%s2091_s26 + $0x78] sm:$0xff] }
  0x3c   : > { %1774 = vmatmul.msk.f32.gmra.mxu1 %vm319_vm0, %v179_v30  ;;  %1790 = vmatmul.msk.f32.gmra.mxu3 %vm319_vm0, %v196_v31  ;;  %v275_v30 = vrot.slane %v189_v29, 1 }
  0x3e   : > { %1742 = vmatmul.msk.f32.gmra.mxu0 %vm319_vm0, %v258_v40  ;;  %v276_v31 = vsel %vm247_vm1, %v273_v22, %v275_v30 }
  0x3f   : > { %1758 = vmatmul.msk.f32.gmra.mxu2 %vm319_vm0, %v291_v41  ;;  %v191_v41 = vld [vmem:[%s2091_s26 + $0x80] sm:$0xff]  ;;  %s1662_s26 = sshll.u32 %s166_s17, 4  ;;  %s1663_s26 = int_to_ptr.vmem [resolvable:$true] %s1662_s26 }
  0x44   : > { %1791 = vmatmul.msk.f32.gmra.mxu3 %vm319_vm0, %v197_v37  ;;  %1775 = vmatmul.msk.f32.gmra.mxu1 %vm319_vm0, %v180_v36  ;;  %v277_v36 = vrot.slane %v190_v35, 1 }
  0x46   : > { %1743 = vmatmul.msk.f32.gmra.mxu0 %vm319_vm0, %v260_v46  ;;  %v278_v37 = vsel %vm247_vm1, %v275_v30, %v277_v36 }
  0x47   : > { %1759 = vmatmul.msk.f32.gmra.mxu2 %vm319_vm0, %v293_v47 }
  0x4c   : > { %1776 = vmatmul.msk.f32.gmra.mxu1 %vm319_vm0, %v181_v42  ;;  %1792 = vmatmul.msk.f32.gmra.mxu3 %vm319_vm0, %v198_v43  ;;  %v279_v43 = vrot.slane %v191_v41, 1 }
  0x4e   : > { %1744 = vmatmul.msk.f32.gmra.mxu0 %vm319_vm0, %v262_v52 }
  0x4f   : > { %1760 = vmatmul.msk.f32.gmra.mxu2 %vm319_vm0, %v295_v53 }
  0x54   : > { %1793 = vmatmul.msk.f32.gmra.mxu3 %vm319_vm0, %v199_v49  ;;  %1777 = vmatmul.msk.f32.gmra.mxu1 %vm319_vm0, %v182_v48  ;;  %v280_v48 = vsel %vm247_vm1, %v277_v36, %v279_v43  ;;  %v313_v49 = vsel %vm247_vm1, %v310_v33, %v312_v45 }
  0x56   : > { %1745 = vmatmul.msk.f32.gmra.mxu0 %vm319_vm0, %v264_v58 }
  0x57   : > { %1761 = vmatmul.msk.f32.gmra.mxu2 %vm319_vm0, %v297_v59 }
  0x5c   : > { %1794 = vmatmul.msk.f32.gmra.mxu3 %vm319_vm0, %v200_v55  ;;  %1778 = vmatmul.msk.f32.gmra.mxu1 %vm319_vm0, %v183_v54 }
  0x5e   : > { %1746 = vmatmul.msk.f32.gmra.mxu0 %vm319_vm0, %v266_v0 }
  0x5f   : > { %1762 = vmatmul.msk.f32.gmra.mxu2 %vm319_vm0, %v299_v1 }
  0x64   : > { %1779 = vmatmul.msk.f32.gmra.mxu1 %vm319_vm0, %v184_v60  ;;  %1795 = vmatmul.msk.f32.gmra.mxu3 %vm319_vm0, %v201_v61 }
  0x66   : > { %1747 = vmatmul.msk.f32.gmra.mxu0 %vm319_vm0, %v268_v6 }
  0x67   : > { %1763 = vmatmul.msk.f32.gmra.mxu2 %vm319_vm0, %v301_v7 }
  0x6c   : > { %1796 = vmatmul.msk.f32.gmra.mxu3 %vm319_vm0, %v202_v3  ;;  %1780 = vmatmul.msk.f32.gmra.mxu1 %vm319_vm0, %v185_v2 }
  0x6e   : > { %1748 = vmatmul.msk.f32.gmra.mxu0 %vm319_vm0, %v270_v12 }
  0x6f   : > { %1764 = vmatmul.msk.f32.gmra.mxu2 %vm319_vm0, %v303_v13 }
  0x74   : > { %1797 = vmatmul.msk.f32.gmra.mxu3 %vm319_vm0, %v203_v9  ;;  %1781 = vmatmul.msk.f32.gmra.mxu1 %vm319_vm0, %v186_v8 }
  0x76   : > { %1749 = vmatmul.msk.f32.gmra.mxu0 %vm319_vm0, %v272_v18 }
  0x77   : > { %1765 = vmatmul.msk.f32.gmra.mxu2 %vm319_vm0, %v305_v19 }
  0x7c   : > { %1782 = vmatmul.msk.f32.gmra.mxu1 %vm319_vm0, %v187_v14  ;;  %1798 = vmatmul.msk.f32.gmra.mxu3 %vm319_vm0, %v204_v15 }
  0x7e   : > { %1750 = vmatmul.msk.f32.gmra.mxu0 %vm319_vm0, %v274_v24 }
  0x7f   : > { %1766 = vmatmul.msk.f32.gmra.mxu2 %vm319_vm0, %v307_v25 }
  0x84   : > { %1799 = vmatmul.msk.f32.gmra.mxu3 %vm319_vm0, %v205_v21  ;;  %1783 = vmatmul.msk.f32.gmra.mxu1 %vm319_vm0, %v188_v20 }
  0x86   : > { %1751 = vmatmul.msk.f32.gmra.mxu0 %vm319_vm0, %v276_v31 }
  0x87   : > { %1767 = vmatmul.msk.f32.gmra.mxu2 %vm319_vm0, %v309_v28 }
  0x8c   : > { %1800 = vmatmul.msk.f32.gmra.mxu3 %vm319_vm0, %v206_v26  ;;  %1784 = vmatmul.msk.f32.gmra.mxu1 %vm319_vm0, %v189_v29 }
  0x8e   : > { %1752 = vmatmul.msk.f32.gmra.mxu0 %vm319_vm0, %v278_v37 }
  0x8f   : > { %1768 = vmatmul.msk.f32.gmra.mxu2 %vm319_vm0, %v311_v34 }
  0x94   : > { %1801 = vmatmul.msk.f32.gmra.mxu3 %vm319_vm0, %v207_v32  ;;  %1785 = vmatmul.msk.f32.gmra.mxu1 %vm319_vm0, %v190_v35 }
  0x96   : > { %1753 = vmatmul.msk.f32.gmra.mxu0 %vm319_vm0, %v280_v48 }
  0x97   : > { %1769 = vmatmul.msk.f32.gmra.mxu2 %vm319_vm0, %v313_v49 }
  0x99   : > { %v578_v38 = vpop.f32.mrf.mxu1 }
  0x9b   : > { %v401_v40 = vpop.f32.mrf.mxu0 }
  0x9c   : > { %v579_v42 = vadd.f32 %v578_v38, %v401_v40 }
  0x9e   : > { %v678_v46 = vadd.f32 %v2220_v39, %v579_v42 }
  0x9f   : > { %v626_v47 = vpop.f32.mrf.mxu3 }
  0xa0   : > { %v2228_v50 = vmax.f32 %v678_v46, 0.0 }
  0xa1   : > { %v581_v51 = vpop.f32.mrf.mxu1 }
  0xa2   : > { %v449_v52 = vpop.f32.mrf.mxu2  ;;  %v742_v53 = vsel %vm319_vm0, %v2228_v50, 0.0  ;;  %v870_v54 = vmul.f32 %v2228_v50, %v2228_v50 }
  0xa3   : > { %v627_v55 = vadd.f32 %v626_v47, %v449_v52  ;;  %743 = vadd.xlane.f32.xlu0 %v742_v53  ;;  %v404_v56 = vpop.f32.mrf.mxu0 }
  0xa4   : > { %v582_v57 = vadd.f32 %v581_v51, %v404_v56  ;;  %v902_v58 = vsel %vm319_vm0, %v870_v54, 0.0 }
  0xa5   : > { %v694_v59 = vadd.f32 %v2220_v39, %v627_v55  ;;  %903 = vadd.xlane.f32.xlu2 %v902_v58 }
  0xa6   : > { %v679_v60 = vadd.f32 %v2220_v39, %v582_v57 }
  0xa7   : > { %v629_v61 = vpop.f32.mrf.mxu3  ;;  %v2238_v62 = vmax.f32 %v694_v59, 0.0 }
  0xa8   : > { %v2240_v63 = vmax.f32 %v679_v60, 0.0 }
  0xa9   : > { %v790_v0 = vsel %vm319_vm0, %v2238_v62, 0.0  ;;  %v584_v1 = vpop.f32.mrf.mxu1  ;;  %v886_v9 = vmul.f32 %v2238_v62, %v2238_v62 }
  0xaa   : > { %791 = vadd.xlane.f32.xlu1 %v790_v0  ;;  %v452_v2 = vpop.f32.mrf.mxu2  ;;  %v745_v3 = vsel %vm319_vm0, %v2240_v63, 0.0  ;;  %v871_v24 = vmul.f32 %v2240_v63, %v2240_v63 }
  0xab   : > { %v630_v4 = vadd.f32 %v629_v61, %v452_v2  ;;  %746 = vadd.xlane.f32.xlu0 %v745_v3  ;;  %v407_v5 = vpop.f32.mrf.mxu0  ;;  %v950_v16 = vsel %vm319_vm0, %v886_v9, 0.0 }
  0xac   : > { %v585_v6 = vadd.f32 %v584_v1, %v407_v5  ;;  %v905_v30 = vsel %vm319_vm0, %v871_v24, 0.0 }
  0xad   : > { %v695_v7 = vadd.f32 %v2220_v39, %v630_v4 }
  0xae   : > { %v680_v8 = vadd.f32 %v2220_v39, %v585_v6 }
  0xaf   : > { %v2250_v10 = vmax.f32 %v695_v7, 0.0  ;;  %v632_v11 = vpop.f32.mrf.mxu3 }
  0xb0   : > { %v2252_v12 = vmax.f32 %v680_v8, 0.0 }
  0xb1   : > { %v793_v13 = vsel %vm319_vm0, %v2250_v10, 0.0  ;;  %v587_v14 = vpop.f32.mrf.mxu1  ;;  %v887_v21 = vmul.f32 %v2250_v10, %v2250_v10 }
  0xb2   : > { %v455_v15 = vpop.f32.mrf.mxu2  ;;  %794 = vadd.xlane.f32.xlu2 %v793_v13  ;;  %v748_v17 = vsel %vm319_vm0, %v2252_v12, 0.0  ;;  %v872_v40 = vmul.f32 %v2252_v12, %v2252_v12 }
  0xb3   : > { %v633_v18 = vadd.f32 %v632_v11, %v455_v15  ;;  %951 = vadd.xlane.f32.xlu0 %v950_v16  ;;  %749 = vadd.xlane.f32.xlu1 %v748_v17  ;;  %v410_v19 = vpop.f32.mrf.mxu0  ;;  %v953_v27 = vsel %vm319_vm0, %v887_v21, 0.0 }
  0xb4   : > { %v588_v20 = vadd.f32 %v587_v14, %v410_v19  ;;  %v908_v46 = vsel %vm319_vm0, %v872_v40, 0.0 }
  0xb5   : > { %v696_v22 = vadd.f32 %v2220_v39, %v633_v18 }
  0xb6   : > { %v681_v23 = vadd.f32 %v2220_v39, %v588_v20 }
  0xb7   : > { %v2265_v25 = vmax.f32 %v696_v22, 0.0  ;;  %v635_v26 = vpop.f32.mrf.mxu3 }
  0xb8   : > { %v2268_v28 = vmax.f32 %v681_v23, 0.0 }
  0xb9   : > { %v888_v29 = vmul.f32 %v2265_v25, %v2265_v25  ;;  %v590_v32 = vpop.f32.mrf.mxu1  ;;  %v796_v43 = vsel %vm319_vm0, %v2265_v25, 0.0 }
  0xba   : > { %v458_v31 = vpop.f32.mrf.mxu2  ;;  %v873_v37 = vmul.f32 %v2268_v28, %v2268_v28  ;;  %v751_v55 = vsel %vm319_vm0, %v2268_v28, 0.0 }
  0xbb   : > { %v956_v33 = vsel %vm319_vm0, %v888_v29, 0.0  ;;  %906 = vadd.xlane.f32.xlu0 %v905_v30  ;;  %954 = vadd.xlane.f32.xlu1 %v953_v27  ;;  %v636_v34 = vadd.f32 %v635_v26, %v458_v31  ;;  %v413_v35 = vpop.f32.mrf.mxu0 }
  0xbc   : > { %957 = vadd.xlane.f32.xlu2 %v956_v33  ;;  %v591_v38 = vadd.f32 %v590_v32, %v413_v35  ;;  %v911_v44 = vsel %vm319_vm0, %v873_v37, 0.0 }
  0xbd   : > { %v697_v36 = vadd.f32 %v2220_v39, %v636_v34 }
  0xbe   : > { %v682_v45 = vadd.f32 %v2220_v39, %v591_v38 }
  0xbf   : > { %v638_v41 = vpop.f32.mrf.mxu3  ;;  %v2279_v42 = vmax.f32 %v697_v36, 0.0 }
  0xc0   : > { %v2288_v49 = vmax.f32 %v682_v45, 0.0 }
  0xc1   : > { %v889_v48 = vmul.f32 %v2279_v42, %v2279_v42  ;;  %v593_v52 = vpop.f32.mrf.mxu1  ;;  %v799_v8 = vsel %vm319_vm0, %v2279_v42, 0.0 }
  0xc2   : > { %v461_v47 = vpop.f32.mrf.mxu2  ;;  %v754_v57 = vsel %vm319_vm0, %v2288_v49, 0.0  ;;  %v874_v61 = vmul.f32 %v2288_v49, %v2288_v49 }
  0xc3   : > { %797 = vadd.xlane.f32.xlu0 %v796_v43  ;;  %909 = vadd.xlane.f32.xlu1 %v908_v46  ;;  %v639_v51 = vadd.f32 %v638_v41, %v461_v47  ;;  %v416_v53 = vpop.f32.mrf.mxu0  ;;  %v959_v54 = vsel %vm319_vm0, %v889_v48, 0.0 }
  0xc4   : > { %912 = vadd.xlane.f32.xlu2 %v911_v44  ;;  %v594_v1 = vadd.f32 %v593_v52, %v416_v53  ;;  %v914_v3 = vsel %vm319_vm0, %v874_v61, 0.0 }
  0xc5   : > { %v698_v56 = vadd.f32 %v2220_v39, %v639_v51 }
  0xc6   : > { %v683_v5 = vadd.f32 %v2220_v39, %v594_v1 }
  0xc7   : > { %v641_v58 = vpop.f32.mrf.mxu3  ;;  %v2298_v0 = vmax.f32 %v698_v56, 0.0 }
  0xc8   : > { %v2311_v14 = vmax.f32 %v683_v5, 0.0 }
  0xc9   : > { %v802_v4 = vsel %vm319_vm0, %v2298_v0, 0.0  ;;  %v596_v6 = vpop.f32.mrf.mxu1  ;;  %v890_v11 = vmul.f32 %v2298_v0, %v2298_v0 }
  0xca   : > { %v464_v59 = vpop.f32.mrf.mxu2  ;;  %v757_v21 = vsel %vm319_vm0, %v2311_v14, 0.0  ;;  %v875_v24 = vmul.f32 %v2311_v14, %v2311_v14 }
  0xcb   : > { %960 = vadd.xlane.f32.xlu0 %v959_v54  ;;  %752 = vadd.xlane.f32.xlu1 %v751_v55  ;;  %v642_v60 = vadd.f32 %v641_v58, %v464_v59  ;;  %v419_v7 = vpop.f32.mrf.mxu0  ;;  %v962_v17 = vsel %vm319_vm0, %v890_v11, 0.0 }
  0xcc   : > { %755 = vadd.xlane.f32.xlu2 %v754_v57  ;;  %v597_v13 = vadd.f32 %v596_v6, %v419_v7  ;;  %v917_v33 = vsel %vm319_vm0, %v875_v24, 0.0 }
  0xcd   : > { %v699_v2 = vadd.f32 %v2220_v39, %v642_v60 }
  0xce   : > { %v684_v19 = vadd.f32 %v2220_v39, %v597_v13 }
  0xcf   : > { %v2307_v9 = vmax.f32 %v699_v2, 0.0  ;;  %v644_v16 = vpop.f32.mrf.mxu3 }
  0xd0   : > { %v2319_v22 = vmax.f32 %v684_v19, 0.0 }
  0xd1   : > { %v805_v18 = vsel %vm319_vm0, %v2307_v9, 0.0  ;;  %v891_v26 = vmul.f32 %v2307_v9, %v2307_v9  ;;  %v599_v29 = vpop.f32.mrf.mxu1 }
  0xd2   : > { %v467_v15 = vpop.f32.mrf.mxu2  ;;  %v760_v34 = vsel %vm319_vm0, %v2319_v22, 0.0  ;;  %v876_v41 = vmul.f32 %v2319_v22, %v2319_v22 }
  0xd3   : > { %800 = vadd.xlane.f32.xlu1 %v799_v8  ;;  %915 = vadd.xlane.f32.xlu0 %v914_v3  ;;  %v645_v20 = vadd.f32 %v644_v16, %v467_v15  ;;  %v422_v27 = vpop.f32.mrf.mxu0  ;;  %v965_v36 = vsel %vm319_vm0, %v891_v26, 0.0 }
  0xd4   : > { %803 = vadd.xlane.f32.xlu2 %v802_v4  ;;  %v600_v35 = vadd.f32 %v599_v29, %v422_v27  ;;  %v920_v51 = vsel %vm319_vm0, %v876_v41, 0.0 }
  0xd5   : > { %v700_v23 = vadd.f32 %v2220_v39, %v645_v20 }
  0xd6   : > { %v685_v37 = vadd.f32 %v2220_v39, %v600_v35 }
  0xd7   : > { %v647_v31 = vpop.f32.mrf.mxu3  ;;  %v2326_v32 = vmax.f32 %v700_v23, 0.0 }
  0xd8   : > { %v2337_v45 = vmax.f32 %v685_v37, 0.0 }
  0xd9   : > { %3542 = vst [vmem:[#allocation5_spill] sm:$0xff] %v2326_v32  ;;  %v892_v38 = vmul.f32 %v2326_v32, %v2326_v32  ;;  %v602_v43 = vpop.f32.mrf.mxu1  ;;  %v808_v46 = vsel %vm319_vm0, %v2326_v32, 0.0 }
  0xda   : > { %v470_v30 = vpop.f32.mrf.mxu2  ;;  %3543 = vst [vmem:[#allocation6_spill] sm:$0xff] %v2337_v45  ;;  %v877_v55 = vmul.f32 %v2337_v45, %v2337_v45  ;;  %v763_v60 = vsel %vm319_vm0, %v2337_v45, 0.0 }
  0xdb   : > { %963 = vadd.xlane.f32.xlu1 %v962_v17  ;;  %806 = vadd.xlane.f32.xlu0 %v805_v18  ;;  %v648_v40 = vadd.f32 %v647_v31, %v470_v30  ;;  %v425_v44 = vpop.f32.mrf.mxu0  ;;  %v968_v47 = vsel %vm319_vm0, %v892_v38, 0.0 }
  0xdc   : > { %758 = vadd.xlane.f32.xlu2 %v757_v21  ;;  %v603_v57 = vadd.f32 %v602_v43, %v425_v44  ;;  %v923_v59 = vsel %vm319_vm0, %v877_v55, 0.0 }
  0xdd   : > { %v701_v48 = vadd.f32 %v2220_v39, %v648_v40 }
  0xde   : > { %v686_v1 = vadd.f32 %v2220_v39, %v603_v57 }
  0xdf   : > { %v650_v53 = vpop.f32.mrf.mxu3  ;;  %v2346_v56 = vmax.f32 %v701_v48, 0.0 }
  0xe0   : > { %v2359_v7 = vmax.f32 %v686_v1, 0.0 }
  0xe1   : > { %3544 = vst [vmem:[#allocation7_spill] sm:$0xff] %v2346_v56  ;;  %v811_v61 = vsel %vm319_vm0, %v2346_v56, 0.0  ;;  %v605_v2 = vpop.f32.mrf.mxu1  ;;  %v893_v5 = vmul.f32 %v2346_v56, %v2346_v56 }
  0xe2   : > { %v473_v52 = vpop.f32.mrf.mxu2  ;;  %3546 = vst [vmem:[#allocation9_spill] sm:$0xff] %v2359_v7  ;;  %v766_v18 = vsel %vm319_vm0, %v2359_v7, 0.0  ;;  %v878_v21 = vmul.f32 %v2359_v7, %v2359_v7 }
  0xe3   : > { %918 = vadd.xlane.f32.xlu1 %v917_v33  ;;  %761 = vadd.xlane.f32.xlu0 %v760_v34  ;;  %v651_v54 = vadd.f32 %v650_v53, %v473_v52  ;;  %v428_v3 = vpop.f32.mrf.mxu0  ;;  %v971_v15 = vsel %vm319_vm0, %v893_v5, 0.0 }
  0xe4   : > { %966 = vadd.xlane.f32.xlu2 %v965_v36  ;;  %v606_v6 = vadd.f32 %v605_v2, %v428_v3  ;;  %v926_v31 = vsel %vm319_vm0, %v878_v21, 0.0 }
  0xe5   : > { %v702_v58 = vadd.f32 %v2220_v39, %v651_v54 }
  0xe6   : > { %v687_v16 = vadd.f32 %v2220_v39, %v606_v6 }
  0xe7   : > { %v2355_v4 = vmax.f32 %v702_v58, 0.0  ;;  %v653_v11 = vpop.f32.mrf.mxu3 }
  0xe8   : > { %v2367_v19 = vmax.f32 %v687_v16, 0.0 }
  0xe9   : > { %3545 = vst [vmem:[#allocation8_spill] sm:$0xff] %v2355_v4  ;;  %v814_v13 = vsel %vm319_vm0, %v2355_v4, 0.0  ;;  %v894_v23 = vmul.f32 %v2355_v4, %v2355_v4  ;;  %v608_v26 = vpop.f32.mrf.mxu1 }
  0xea   : > { %v476_v8 = vpop.f32.mrf.mxu2  ;;  %3547 = vst [vmem:[#allocation10_spill] sm:$0xff] %v2367_v19  ;;  %v769_v33 = vsel %vm319_vm0, %v2367_v19, 0.0  ;;  %v879_v40 = vmul.f32 %v2367_v19, %v2367_v19 }
  0xeb   : > { %809 = vadd.xlane.f32.xlu1 %v808_v46  ;;  %969 = vadd.xlane.f32.xlu0 %v968_v47  ;;  %v654_v17 = vadd.f32 %v653_v11, %v476_v8  ;;  %v431_v24 = vpop.f32.mrf.mxu0  ;;  %v974_v35 = vsel %vm319_vm0, %v894_v23, 0.0 }
  0xec   : > { %921 = vadd.xlane.f32.xlu2 %v920_v51  ;;  %v609_v34 = vadd.f32 %v608_v26, %v431_v24  ;;  %v929_v51 = vsel %vm319_vm0, %v879_v40, 0.0 }
  0xed   : > { %v703_v20 = vadd.f32 %v2220_v39, %v654_v17 }
  0xee   : > { %v688_v36 = vadd.f32 %v2220_v39, %v609_v34 }
  0xef   : > { %v656_v29 = vpop.f32.mrf.mxu3  ;;  %v2374_v30 = vmax.f32 %v703_v20, 0.0 }
  0xf0   : > { %v2385_v44 = vmax.f32 %v688_v36, 0.0 }
  0xf1   : > { %3548 = vst [vmem:[#allocation11_spill] sm:$0xff] %v2374_v30  ;;  %v895_v37 = vmul.f32 %v2374_v30, %v2374_v30  ;;  %v611_v41 = vpop.f32.mrf.mxu1  ;;  %v817_v46 = vsel %vm319_vm0, %v2374_v30, 0.0 }
  0xf2   : > { %v479_v27 = vpop.f32.mrf.mxu2  ;;  %3549 = vst [vmem:[#allocation12_spill] sm:$0xff] %v2385_v44  ;;  %v880_v55 = vmul.f32 %v2385_v44, %v2385_v44 }
  0xf3   : > { %924 = vadd.xlane.f32.xlu0 %v923_v59  ;;  %764 = vadd.xlane.f32.xlu1 %v763_v60  ;;  %v657_v38 = vadd.f32 %v656_v29, %v479_v27  ;;  %v434_v43 = vpop.f32.mrf.mxu0  ;;  %v977_v47 = vsel %vm319_vm0, %v895_v37, 0.0 }
  0xf4   : > { %812 = vadd.xlane.f32.xlu2 %v811_v61  ;;  %v612_v58 = vadd.f32 %v611_v41, %v434_v43  ;;  %v932_v60 = vsel %vm319_vm0, %v880_v55, 0.0  ;;  %v772_v61 = vsel %vm319_vm0, %v2385_v44, 0.0 }
  0xf5   : > { %v704_v48 = vadd.f32 %v2220_v39, %v657_v38 }
  0xf6   : > { %v689_v2 = vadd.f32 %v2220_v39, %v612_v58 }
  0xf7   : > { %v659_v53 = vpop.f32.mrf.mxu3  ;;  %v2394_v57 = vmax.f32 %v704_v48, 0.0 }
  0xf9   : > { %3550 = vst [vmem:[#allocation13_spill] sm:$0xff] %v2394_v57  ;;  %v820_v1 = vsel %vm319_vm0, %v2394_v57, 0.0  ;;  %v614_v3 = vpop.f32.mrf.mxu1  ;;  %v896_v8 = vmul.f32 %v2394_v57, %v2394_v57 }
  0xfa   : > { %v482_v52 = vpop.f32.mrf.mxu2 }
  0xfb   : > { %815 = vadd.xlane.f32.xlu0 %v814_v13  ;;  %972 = vadd.xlane.f32.xlu1 %v971_v15  ;;  %v660_v54 = vadd.f32 %v659_v53, %v482_v52  ;;  %v437_v5 = vpop.f32.mrf.mxu0  ;;  %v2407_v13 = vmax.f32 %v689_v2, 0.0  ;;  %v980_v20 = vsel %vm319_vm0, %v896_v8, 0.0 }
  0xfc   : > { %767 = vadd.xlane.f32.xlu2 %v766_v18  ;;  %v615_v11 = vadd.f32 %v614_v3, %v437_v5 }
  0xfd   : > { %v705_v59 = vadd.f32 %v2220_v39, %v660_v54  ;;  %3552 = vst [vmem:[#allocation15_spill] sm:$0xff] %v2407_v13  ;;  %v775_v24 = vsel %vm319_vm0, %v2407_v13, 0.0  ;;  %v881_v29 = vmul.f32 %v2407_v13, %v2407_v13 }
  0xfe   : > { %v690_v21 = vadd.f32 %v2220_v39, %v615_v11 }
  0xff   : > { %v2403_v6 = vmax.f32 %v705_v59, 0.0  ;;  %v662_v16 = vpop.f32.mrf.mxu3  ;;  %v935_v43 = vsel %vm319_vm0, %v881_v29, 0.0 }
 0x100   : > { %v2417_v26 = vmax.f32 %v690_v21, 0.0 }
 0x101   : > { %3551 = vst [vmem:[#allocation14_spill] sm:$0xff] %v2403_v6  ;;  %v823_v18 = vsel %vm319_vm0, %v2403_v6, 0.0  ;;  %v617_v34 = vpop.f32.mrf.mxu1 }
 0x102   : > { %v485_v15 = vpop.f32.mrf.mxu2  ;;  %3553 = vst [vmem:[#allocation16_spill] sm:$0xff] %v2417_v26  ;;  %v882_v54 = vmul.f32 %v2417_v26, %v2417_v26 }
 0x103   : > { %927 = vadd.xlane.f32.xlu1 %v926_v31  ;;  %770 = vadd.xlane.f32.xlu0 %v769_v33  ;;  %v663_v23 = vadd.f32 %v662_v16, %v485_v15  ;;  %v440_v31 = vpop.f32.mrf.mxu0  ;;  %v897_v33 = vmul.f32 %v2403_v6, %v2403_v6 }
 0x104   : > { %975 = vadd.xlane.f32.xlu2 %v974_v35  ;;  %v938_v8 = vsel %vm319_vm0, %v882_v54, 0.0 }
 0x105   : > { %v706_v27 = vadd.f32 %v2220_v39, %v663_v23  ;;  %v983_v48 = vsel %vm319_vm0, %v897_v33, 0.0 }
 0x107   : > { %v665_v40 = vpop.f32.mrf.mxu3  ;;  %v2428_v41 = vmax.f32 %v706_v27, 0.0 }
 0x109   : > { %3554 = vst [vmem:[#allocation17_spill] sm:$0xff] %v2428_v41  ;;  %v898_v52 = vmul.f32 %v2428_v41, %v2428_v41  ;;  %v620_v55 = vpop.f32.mrf.mxu1  ;;  %v826_v2 = vsel %vm319_vm0, %v2428_v41, 0.0 }
 0x10a   : > { %v488_v35 = vpop.f32.mrf.mxu2 }
 0x10b   : > { %818 = vadd.xlane.f32.xlu1 %v817_v46  ;;  %978 = vadd.xlane.f32.xlu0 %v977_v47  ;;  %v778_v46 = vsel %vm319_vm0, %v2417_v26, 0.0  ;;  %v618_v47 = vadd.f32 %v617_v34, %v440_v31  ;;  %v666_v53 = vadd.f32 %v665_v40, %v488_v35  ;;  %v986_v3 = vsel %vm319_vm0, %v898_v52, 0.0 }
 0x10c   : > { %930 = vadd.xlane.f32.xlu2 %v929_v51 }
 0x10d   : > { %v691_v51 = vadd.f32 %v2220_v39, %v618_v47  ;;  %v707_v5 = vadd.f32 %v2220_v39, %v666_v53 }
 0x10f   : > { %v668_v15 = vpop.f32.mrf.mxu3 }
 0x111   : > { %v623_v40 = vpop.f32.mrf.mxu1 }
 0x112   : > { %v491_v11 = vpop.f32.mrf.mxu2 }
 0x113   : > { %933 = vadd.xlane.f32.xlu0 %v932_v60  ;;  %773 = vadd.xlane.f32.xlu1 %v772_v61  ;;  %v443_v61 = vpop.f32.mrf.mxu0  ;;  %v669_v16 = vadd.f32 %v668_v15, %v491_v11 }
 0x114   : > { %821 = vadd.xlane.f32.xlu2 %v820_v1  ;;  %v2441_v1 = vmax.f32 %v691_v51, 0.0  ;;  %v621_v21 = vadd.f32 %v620_v55, %v443_v61 }
 0x115   : > { %v708_v29 = vadd.f32 %v2220_v39, %v669_v16 }
 0x116   : > { %v2409_v17 = vpop.xlane.xlu0 %743  ;;  %3555 = vst [vmem:[#allocation18_spill] sm:$0xff] %v2441_v1  ;;  %v781_v33 = vsel %vm319_vm0, %v2441_v1, 0.0  ;;  %v692_v35 = vadd.f32 %v2220_v39, %v621_v21 }
 0x117   : > { %v2466_v51 = vmul.f32 0.03125, %v2409_v17  ;;  %v671_v54 = vpop.f32.mrf.mxu3 }
 0x118   : > { %v904_v38 = vpop.xlane.xlu2 %903  ;;  %v2468_v52 = vmax.f32 %v692_v35, 0.0 }
 0x119   : > { %v1030_v17 = vmul.f32 %v2466_v51, %v2466_v51  ;;  %v998_v15 = vmul.f32 0.03125, %v904_v38 }
 0x11a   : > { %3558 = vst [vmem:[#allocation21_spill] sm:$0xff] %v2468_v52  ;;  %v494_v53 = vpop.f32.mrf.mxu2  ;;  %v784_v16 = vsel %vm319_vm0, %v2468_v52, 0.0 }
 0x11b   : > { %824 = vadd.xlane.f32.xlu0 %v823_v18  ;;  %981 = vadd.xlane.f32.xlu1 %v980_v20  ;;  %v883_v18 = vmul.f32 %v2441_v1, %v2441_v1  ;;  %v2450_v20 = vmax.f32 %v707_v5, 0.0  ;;  %v672_v11 = vadd.f32 %v671_v54, %v494_v53 }
 0x11c   : > { %776 = vadd.xlane.f32.xlu2 %v775_v24 }
 0x11d   : > { %v2424_v36 = vpop.xlane.xlu1 %791  ;;  %3556 = vst [vmem:[#allocation19_spill] sm:$0xff] %v2450_v20  ;;  %v941_v31 = vsel %vm319_vm0, %v883_v18, 0.0  ;;  %v829_v34 = vsel %vm319_vm0, %v2450_v20, 0.0  ;;  %v899_v47 = vmul.f32 %v2450_v20, %v2450_v20  ;;  %v709_v21 = vadd.f32 %v2220_v39, %v672_v11 }
 0x11e   : > { %v2426_v37 = vpop.xlane.xlu0 %746 }
 0x11f   : > { %v989_v5 = vsel %vm319_vm0, %v899_v47, 0.0 }
 0x123   : > { %936 = vadd.xlane.f32.xlu1 %v935_v43  ;;  %779 = vadd.xlane.f32.xlu0 %v778_v46  ;;  %v446_v43 = vpop.f32.mrf.mxu0  ;;  %v2461_v46 = vmax.f32 %v708_v29, 0.0  ;;  %v884_v29 = vmul.f32 %v2468_v52, %v2468_v52 }
 0x124   : > { %984 = vadd.xlane.f32.xlu2 %v983_v48  ;;  %v624_v48 = vadd.f32 %v623_v40, %v446_v43 }
 0x125   : > { %v795_v60 = vpop.xlane.xlu2 %794  ;;  %3557 = vst [vmem:[#allocation20_spill] sm:$0xff] %v2461_v46  ;;  %v900_v38 = vmul.f32 %v2461_v46, %v2461_v46  ;;  %v944_v53 = vsel %vm319_vm0, %v884_v29, 0.0 }
 0x126   : > { %v952_v58 = vpop.xlane.xlu0 %951  ;;  %v2439_v59 = vpop.xlane.xlu1 %749 }
 0x12b   : > { %827 = vadd.xlane.f32.xlu1 %v826_v2  ;;  %987 = vadd.xlane.f32.xlu0 %v986_v3  ;;  %v832_v3 = vsel %vm319_vm0, %v2461_v46, 0.0 }
 0x12c   : > { %939 = vadd.xlane.f32.xlu2 %v938_v8  ;;  %v693_v8 = vadd.f32 %v2220_v39, %v624_v48  ;;  %v2496_v48 = vmul.f32 0.03125, %v795_v60  ;;  %v2498_v39 = vmax.f32 %v709_v21, 0.0  ;;  %v2509_v60 = vmul.f32 0.03125, %v2426_v37 }
 0x12e   : > { %v907_v23 = vpop.xlane.xlu0 %906  ;;  %v955_v24 = vpop.xlane.xlu1 %954  ;;  %v2482_v18 = vmax.f32 %v693_v8, 0.0  ;;  %3560 = vst [vmem:[#allocation23_spill] sm:$0xff] %v2498_v39  ;;  %v901_v11 = vmul.f32 %v2498_v39, %v2498_v39  ;;  %v1031_v37 = vmul.f32 %v2509_v60, %v2509_v60 }
 0x12f   : > { %v2452_v27 = vpop.xlane.xlu2 %957  ;;  %v1015_v8 = vmul.f32 0.03125, %v955_v24 }
 0x130   : > { %3559 = vst [vmem:[#allocation22_spill] sm:$0xff] %v2482_v18 }
 0x133   : > { %942 = vadd.xlane.f32.xlu0 %v941_v31  ;;  %782 = vadd.xlane.f32.xlu1 %v781_v33  ;;  %v1062_v31 = vsub.f32 %v998_v15, %v1030_v17  ;;  %v2488_v33 = vmul.f32 0.03125, %v2424_v36  ;;  %v787_v36 = vsel %vm319_vm0, %v2482_v18, 0.0  ;;  %v885_v15 = vmul.f32 %v2482_v18, %v2482_v18 }
 0x134   : > { %830 = vadd.xlane.f32.xlu2 %v829_v34  ;;  %v1014_v34 = vmul.f32 0.03125, %v952_v58 }
 0x135   : > { %v1046_v43 = vmul.f32 %v2488_v33, %v2488_v33  ;;  %v2503_v58 = vadd.f32 1e-05, %v1062_v31 }
 0x136   : > { %v798_v55 = vpop.xlane.xlu0 %797  ;;  %v2470_v61 = vpop.xlane.xlu1 %909 }
 0x137   : > { %v2472_v2 = vpop.xlane.xlu2 %912  ;;  %v1078_v54 = vsub.f32 %v1014_v34, %v1046_v43  ;;  %1863 = vrsqrt.f32 %v2503_v58  ;;  %v835_v34 = vsel %vm319_vm0, %v2498_v39, 0.0  ;;  %v947_v43 = vsel %vm319_vm0, %v885_v15, 0.0 }
 0x138   : > { %v1001_v13 = vmul.f32 0.03125, %v2472_v2  ;;  %vm1164_vm3 = vweird.f32 %v2503_v58 }
 0x139   : > { %v2514_v17 = vadd.f32 1e-05, %v1078_v54  ;;  %v2531_v54 = vmul.f32 0.03125, %v798_v55 }
 0x13b   : > { %833 = vadd.xlane.f32.xlu0 %v832_v3  ;;  %990 = vadd.xlane.f32.xlu1 %v989_v5  ;;  %v992_v3 = vsel %vm319_vm0, %v900_v38, 0.0  ;;  %v1047_v5 = vmul.f32 %v2496_v48, %v2496_v48  ;;  %v995_v38 = vsel %vm319_vm0, %v901_v11, 0.0  ;;  %1865 = vrsqrt.f32 %v2514_v17 }
 0x13c   : > { %785 = vadd.xlane.f32.xlu2 %v784_v16  ;;  %v999_v16 = vmul.f32 0.03125, %v907_v23  ;;  %v1048_v55 = vmul.f32 %v2531_v54, %v2531_v54  ;;  %vm1324_vm6 = vweird.f32 %v2514_v17 }
 0x13d   : > { %v1079_v21 = vsub.f32 %v1015_v8, %v1047_v5  ;;  %v2529_v23 = vpop.eup %1863 }
 0x13e   : > { %v961_v35 = vpop.xlane.xlu0 %960  ;;  %v753_v40 = vpop.xlane.xlu1 %752  ;;  %vm1165_vm2 = vweird.f32 %v2529_v23 }
 0x13f   : > { %v2494_v47 = vpop.xlane.xlu2 %755  ;;  %v2559_v39 = vmul.f32 0.03125, %v753_v40  ;;  %v1017_v46 = vmul.f32 0.03125, %v961_v35  ;;  %vm2603_vm4 = vmor %vm1164_vm3, %vm1165_vm2 }
 0x141   : > { %v2538_v15 = vpop.eup %1865 }
 0x142   : > { %vm1325_vm5 = vweird.f32 %v2538_v15 }
 0x143   : > { %945 = vadd.xlane.f32.xlu1 %v944_v53  ;;  %788 = vadd.xlane.f32.xlu0 %v787_v36  ;;  %v1063_v53 = vsub.f32 %v999_v16, %v1031_v37  ;;  %v2527_v36 = vadd.f32 1e-05, %v1079_v21  ;;  %v1016_v16 = vmul.f32 0.03125, %v2452_v27  ;;  %v2546_v37 = vmul.f32 0.03125, %v2439_v59  ;;  %vm2638_vm7 = vmor %vm1324_vm6, %vm1325_vm5 }
 0x144   : > { %993 = vadd.xlane.f32.xlu2 %v992_v3  ;;  %v1159_v3 = vmul.f32 %v2529_v23, %v2503_v58 }
 0x145   : > { %v2535_v5 = vadd.f32 1e-05, %v1063_v53  ;;  %1867 = vrsqrt.f32 %v2527_v36  ;;  %v1000_v53 = vmul.f32 0.03125, %v2470_v61  ;;  %v1080_v27 = vsub.f32 %v1016_v16, %v1048_v55 }
 0x146   : > { %v801_v29 = vpop.xlane.xlu1 %800  ;;  %v2518_v24 = vpop.xlane.xlu0 %915  ;;  %v1032_v52 = vmul.f32 %v2546_v37, %v2546_v37  ;;  %vm1334_vm9 = vweird.f32 %v2527_v36 }
 0x147   : > { %v804_v31 = vpop.xlane.xlu2 %803  ;;  %1869 = vrsqrt.f32 %v2535_v5  ;;  %v2570_v16 = vadd.f32 1e-05, %v1080_v27  ;;  %vm1174_vm10 = vweird.f32 %v2535_v5 }
 0x148   : > { %v1064_v1 = vsub.f32 %v1000_v53, %v1032_v52  ;;  %v2579_v41 = vmul.f32 0.03125, %v804_v31 }
 0x149   : > { %1871 = vrsqrt.f32 %v2570_v16  ;;  %vm1344_vm15 = vweird.f32 %v2570_v16 }
 0x14a   : > { %v2577_v53 = vadd.f32 1e-05, %v1064_v1  ;;  %v1050_v2 = vmul.f32 %v2579_v41, %v2579_v41 }
 0x14b   : > { %836 = vadd.xlane.f32.xlu1 %v835_v34  ;;  %996 = vadd.xlane.f32.xlu0 %v995_v38  ;;  %v2548_v34 = vmul.f32 0.03125, %v801_v29  ;;  %v1160_v38 = vmul.f32 %v2529_v23, %v1159_v3  ;;  %v2555_v18 = vpop.eup %1867 }
 0x14c   : > { %948 = vadd.xlane.f32.xlu2 %v947_v43  ;;  %v1319_v43 = vmul.f32 %v2538_v15, %v2514_v17  ;;  %v1329_v61 = vmul.f32 %v2555_v18, %v2527_v36  ;;  %1873 = vrsqrt.f32 %v2577_v53  ;;  %v2649_v17 = vld [vmem:[%s3515_s2 + $0x1] ss:$0 sm:$0xff]  ;;  %vm1335_vm8 = vweird.f32 %v2555_v18 }
 0x14d   : > { %v1049_v59 = vmul.f32 %v2548_v34, %v2548_v34  ;;  %v1161_v29 = vmul.f32 0.5, %v1160_v38  ;;  %v2572_v40 = vpop.eup %1869  ;;  %v1033_v38 = vmul.f32 %v2559_v39, %v2559_v39  ;;  %vm2682_vm11 = vmor %vm1334_vm9, %vm1335_vm8  ;;  %vm1184_vm14 = vweird.f32 %v2577_v53 }
 0x14e   : > { %v964_v8 = vpop.xlane.xlu1 %963  ;;  %v807_v11 = vpop.xlane.xlu0 %806  ;;  %v1320_v3 = vmul.f32 %v2538_v15, %v1319_v43  ;;  %v1169_v6 = vmul.f32 %v2572_v40, %v2535_v5  ;;  %v1330_v27 = vmul.f32 %v2555_v18, %v1329_v61  ;;  %vm1175_vm12 = vweird.f32 %v2572_v40 }
 0x14f   : > { %v2543_v21 = vpop.xlane.xlu2 %758  ;;  %v1081_v43 = vsub.f32 %v1017_v46, %v1049_v59  ;;  %v1162_v52 = vsub.f32 1.5, %v1161_v29  ;;  %v1065_v44 = vsub.f32 %v1001_v13, %v1033_v38  ;;  %v1018_v46 = vmul.f32 0.03125, %v964_v8  ;;  %vm2715_vm13 = vmor %vm1174_vm10, %vm1175_vm12 }
 0x150   : > { %v1321_v35 = vmul.f32 0.5, %v1320_v3  ;;  %v1170_v13 = vmul.f32 %v2572_v40, %v1169_v6  ;;  %v1331_v61 = vmul.f32 0.5, %v1330_v27  ;;  %v1094_v6 = vsub.f32 %v2228_v50, %v2466_v51 }
 0x151   : > { %v2585_v57 = vadd.f32 1e-05, %v1081_v43  ;;  %v1163_v29 = vmul.f32 %v2529_v23, %v1162_v52  ;;  %v2598_v38 = vadd.f32 1e-05, %v1065_v44  ;;  %v1082_v8 = vsub.f32 %v1018_v46, %v1050_v2  ;;  %v2601_v43 = vpop.eup %1871 }
 0x152   : > { %v1322_v1 = vsub.f32 1.5, %v1321_v35  ;;  %v2608_v52 = vmul.f32 0.03125, %v2494_v47  ;;  %v1171_v27 = vmul.f32 0.5, %v1170_v13  ;;  %v1002_v46 = vmul.f32 0.03125, %v2518_v24  ;;  %v2622_v47 = vpop.eup %1873 }
 0x153   : > { %1875 = vrsqrt.f32 %v2585_v57  ;;  %v1167_v58 = vsel %vm2603_vm4, %v2529_v23, %v1163_v29  ;;  %v2620_v30 = vmul.f32 0.03125, %v807_v11  ;;  %v1332_v19 = vsub.f32 1.5, %v1331_v61 }
 0x154   : > { %v1323_v44 = vmul.f32 %v2538_v15, %v1322_v1  ;;  %v1034_v2 = vmul.f32 %v2608_v52, %v2608_v52  ;;  %v1339_v50 = vmul.f32 %v2601_v43, %v2570_v16  ;;  %1877 = vrsqrt.f32 %v2598_v38 }
 0x155   : > { %v2627_v51 = vadd.f32 1e-05, %v1082_v8  ;;  %v1051_v23 = vmul.f32 %v2620_v30, %v2620_v30  ;;  %v1110_v24 = vsub.f32 %v2238_v62, %v2488_v33  ;;  %v1179_v62 = vmul.f32 %v2622_v47, %v2577_v53 }
 0x156   : > { %v2564_v26 = vpop.xlane.xlu1 %918  ;;  %v2566_v20 = vpop.xlane.xlu0 %761  ;;  %v1066_v33 = vsub.f32 %v1002_v46, %v1034_v2  ;;  %v1327_v35 = vsel %vm2638_vm7, %v2538_v15, %v1323_v44  ;;  %v1172_v7 = vsub.f32 1.5, %v1171_v27  ;;  %v1333_v4 = vmul.f32 %v2555_v18, %v1332_v19  ;;  %v2674_v44 = vld [vmem:[%s3515_s2 + $0x2] ss:$0 sm:$0xff] }
 0x157   : > { %v967_v55 = vpop.xlane.xlu2 %966  ;;  %v1340_v45 = vmul.f32 %v2601_v43, %v1339_v50  ;;  %1879 = vrsqrt.f32 %v2627_v51  ;;  %v1494_v19 = vmul.f32 %v1327_v35, %v1110_v24  ;;  %v2698_v24 = vmul.f32 0.03125, %v2543_v21 }
 0x158   : > { %v1019_v1 = vmul.f32 0.03125, %v967_v55  ;;  %v1478_v55 = vmul.f32 %v1167_v58, %v1094_v6  ;;  %v1095_v6 = vsub.f32 %v2240_v63, %v2509_v60  ;;  %v1111_v58 = vsub.f32 %v2250_v10, %v2496_v48 }
 0x159   : > { %v2632_v29 = vpop.eup %1875  ;;  %v1180_v60 = vmul.f32 %v2622_v47, %v1179_v62  ;;  %v2687_v36 = vadd.f32 1e-05, %v1066_v33  ;;  %v1341_v27 = vmul.f32 0.5, %v1340_v45  ;;  %v1337_v50 = vsel %vm2682_vm11, %v2555_v18, %v1333_v4 }
 0x15a   : > { %v1349_v2 = vmul.f32 %v2632_v29, %v2585_v57  ;;  %v1083_v46 = vsub.f32 %v1019_v1, %v1051_v23  ;;  %v2666_v56 = vpop.eup %1877  ;;  %v1511_v63 = vmul.f32 %v2649_v17, %v1478_v55  ;;  %v1527_v18 = vmul.f32 %v2649_v17, %v1494_v19 }
 0x15b   : > { %v1189_v23 = vmul.f32 %v2666_v56, %v2598_v38  ;;  %v1181_v35 = vmul.f32 0.5, %v1180_v60  ;;  %1881 = vrsqrt.f32 %v2687_v36  ;;  %v1112_v19 = vsub.f32 %v2265_v25, %v2531_v54 }
 0x15c   : > { %v1350_v1 = vmul.f32 %v2632_v29, %v1349_v2  ;;  %v2700_v11 = vadd.f32 1e-05, %v1083_v46  ;;  %v2711_v33 = vadd.f32 %v2674_v44, %v1511_v63  ;;  %v1003_v2 = vmul.f32 0.03125, %v2564_v26 }
 0x15d   : > { %v2702_v55 = vpop.eup %1879  ;;  %v1342_v63 = vsub.f32 1.5, %v1341_v27  ;;  %v1495_v48 = vmul.f32 %v1337_v50, %v1111_v58  ;;  %v1190_v60 = vmul.f32 %v2666_v56, %v1189_v23  ;;  %vm1345_vm0 = vweird.f32 %v2601_v43 }
 0x15e   : > { %v810_v31 = vpop.xlane.xlu1 %809  ;;  %v2591_v59 = vpop.xlane.xlu0 %969  ;;  %v1351_v10 = vmul.f32 0.5, %v1350_v1  ;;  %v1359_v32 = vmul.f32 %v2702_v55, %v2627_v51  ;;  %1883 = vrsqrt.f32 %v2700_v11  ;;  %vm1185_vm1 = vweird.f32 %v2622_v47  ;;  %vm2767_vm2 = vmor %vm1344_vm15, %vm1345_vm0 }
 0x15f   : > { %v2596_v3 = vpop.xlane.xlu2 %921  ;;  %v2669_v15 = vmul.f32 0.03125, %v810_v31  ;;  %v1173_v31 = vmul.f32 %v2572_v40, %v1172_v7  ;;  %v1020_v45 = vmul.f32 0.03125, %v2591_v59  ;;  %v1035_v59 = vmul.f32 %v2698_v24, %v2698_v24  ;;  %vm2792_vm5 = vmor %vm1184_vm14, %vm1185_vm1 }
 0x160   : > { %v1343_v50 = vmul.f32 %v2601_v43, %v1342_v63  ;;  %v1191_v21 = vmul.f32 0.5, %v1190_v60  ;;  %v1352_v25 = vsub.f32 1.5, %v1351_v10  ;;  %v1360_v26 = vmul.f32 %v2702_v55, %v1359_v32 }
 0x161   : > { %v1052_v7 = vmul.f32 %v2669_v15, %v2669_v15  ;;  %v1177_v5 = vsel %vm2715_vm13, %v2572_v40, %v1173_v31  ;;  %v1182_v40 = vsub.f32 1.5, %v1181_v35  ;;  %v1067_v58 = vsub.f32 %v1003_v2, %v1035_v59  ;;  %v2746_v1 = vpop.eup %1881 }
 0x162   : > { %v1560_v31 = vadd.f32 %v2674_v44, %v1527_v18  ;;  %v1479_v27 = vmul.f32 %v1177_v5, %v1095_v6  ;;  %vm1194_vm3 = vweird.f32 %v2598_v38  ;;  %v1113_v10 = vsub.f32 %v2279_v42, %v2548_v34 }
 0x163   : > { %v1084_v54 = vsub.f32 %v1020_v45, %v1052_v7  ;;  %v1528_v7 = vmul.f32 %v2649_v17, %v1495_v48  ;;  %v2751_v45 = vmul.f32 0.03125, %v2566_v20  ;;  %v1183_v20 = vmul.f32 %v2622_v47, %v1182_v40 }
 0x164   : > { %v2761_v2 = vpop.eup %1883  ;;  %v1512_v48 = vmul.f32 %v2649_v17, %v1479_v27  ;;  %v1347_v16 = vsel %vm2767_vm2, %v2601_v43, %v1343_v50  ;;  %v1199_v5 = vmul.f32 %v2746_v1, %v2687_v36  ;;  %v1192_v40 = vsub.f32 1.5, %v1191_v21 }
 0x165   : > { %v2753_v6 = vadd.f32 1e-05, %v1084_v54  ;;  %v1036_v60 = vmul.f32 %v2751_v45, %v2751_v45  ;;  %v1004_v54 = vmul.f32 0.03125, %v2596_v3  ;;  %v1353_v42 = vmul.f32 %v2632_v29, %v1352_v25 }
 0x166   : > { %v2642_v13 = vpop.xlane.xlu0 %924  ;;  %v2644_v61 = vpop.xlane.xlu1 %764  ;;  %vm1355_vm4 = vweird.f32 %v2632_v29  ;;  %v1361_v34 = vmul.f32 0.5, %v1360_v26  ;;  %v1496_v25 = vmul.f32 %v1347_v16, %v1112_v19  ;;  %vm1354_vm6 = vweird.f32 %v2585_v57 }
 0x167   : > { %v813_v8 = vpop.xlane.xlu2 %812  ;;  %1885 = vrsqrt.f32 %v2753_v6  ;;  %v1187_v53 = vsel %vm2792_vm5, %v2622_v47, %v1183_v20  ;;  %vm2805_vm7 = vmor %vm1354_vm6, %vm1355_vm4  ;;  %v1200_v27 = vmul.f32 %v2746_v1, %v1199_v5  ;;  %v1068_v50 = vsub.f32 %v1004_v54, %v1036_v60 }
 0x168   : > { %v2744_v23 = vmul.f32 0.03125, %v813_v8  ;;  %v2811_v21 = vmul.f32 0.03125, %v2644_v61  ;;  %v1193_v57 = vmul.f32 %v2666_v56, %v1192_v40  ;;  %vm1195_vm8 = vweird.f32 %v2666_v56 }
 0x169   : > { %v1357_v47 = vsel %vm2805_vm7, %v2632_v29, %v1353_v42  ;;  %v1114_v16 = vsub.f32 %v2298_v0, %v2579_v41  ;;  %v1529_v60 = vmul.f32 %v2649_v17, %v1496_v25  ;;  %v2832_v29 = vadd.f32 %v2674_v44, %v1512_v48  ;;  %vm2843_vm9 = vmor %vm1194_vm3, %vm1195_vm8 }
 0x16a   : > { %v1053_v18 = vmul.f32 %v2744_v23, %v2744_v23  ;;  %v3575_v54 = vsub.f32 %v2252_v12, %v2546_v37  ;;  %v1201_v0 = vmul.f32 0.5, %v1200_v27  ;;  %v2847_v41 = vadd.f32 1e-05, %v1068_v50 }
 0x16b   : > { %v1005_v48 = vmul.f32 0.03125, %v2642_v13  ;;  %v1197_v37 = vsel %vm2843_vm9, %v2666_v56, %v1193_v57  ;;  %v1497_v43 = vmul.f32 %v1357_v47, %v1113_v10  ;;  %vm1365_vm10 = vweird.f32 %v2702_v55 }
 0x16c   : > { %v1480_v40 = vmul.f32 %v1187_v53, %v3575_v54  ;;  %v1115_v38 = vsub.f32 %v2307_v9, %v2620_v30  ;;  %vm1364_vm11 = vweird.f32 %v2627_v51  ;;  %v1562_v56 = vadd.f32 %v2674_v44, %v1529_v60 }
 0x16d   : > { %v2837_v42 = vpop.eup %1885  ;;  %v1202_v10 = vsub.f32 1.5, %v1201_v0  ;;  %v3578_v27 = vsub.f32 %v2268_v28, %v2559_v39  ;;  %vm1204_vm12 = vweird.f32 %v2687_v36  ;;  %vm2877_vm13 = vmor %vm1364_vm11, %vm1365_vm10  ;;  %v1099_v57 = vsub.f32 %v2311_v14, %v2698_v24 }
 0x16e   : > { %v2707_v62 = vpop.xlane.xlu0 %815  ;;  %v973_v4 = vpop.xlane.xlu1 %972  ;;  %v1513_v47 = vmul.f32 %v2649_v17, %v1480_v40  ;;  %vm1205_vm14 = vweird.f32 %v2746_v1  ;;  %vm1374_vm15 = vweird.f32 %v2700_v11  ;;  %vm1375_vm0 = vweird.f32 %v2761_v2 }
 0x16f   : > { %v2723_v46 = vpop.xlane.xlu2 %767  ;;  %v1021_v35 = vmul.f32 0.03125, %v973_v4  ;;  %v2775_v4 = vadd.f32 1e-05, %v1067_v58  ;;  %v1369_v58 = vmul.f32 %v2761_v2, %v2700_v11  ;;  %v2814_v19 = vmul.f32 0.03125, %v2707_v62  ;;  %vm2920_vm1 = vmor %vm1204_vm12, %vm1205_vm14 }
 0x170   : > { %v1481_v50 = vmul.f32 %v1197_v37, %v3578_v27  ;;  %v2897_v60 = vmul.f32 0.03125, %v2723_v46  ;;  %v1203_v0 = vmul.f32 %v2746_v1, %v1202_v10  ;;  %vm2933_vm2 = vmor %vm1374_vm15, %vm1375_vm0  ;;  %vm1385_vm4 = vweird.f32 %v2837_v42 }
 0x171   : > { %v1085_v3 = vsub.f32 %v1021_v35, %v1053_v18  ;;  %1887 = vrsqrt.f32 %v2775_v4  ;;  %v1370_v18 = vmul.f32 %v2761_v2, %v1369_v58  ;;  %v1054_v35 = vmul.f32 %v2814_v19, %v2814_v19 }
 0x172   : > { %v1207_v36 = vsel %vm2920_vm1, %v2746_v1, %v1203_v0  ;;  %vm1214_vm3 = vweird.f32 %v2775_v4  ;;  %vm1384_vm6 = vweird.f32 %v2753_v6  ;;  %vm1224_vm9 = vweird.f32 %v2847_v41 }
 0x173   : > { %v2824_v61 = vadd.f32 1e-05, %v1085_v3  ;;  %v1371_v3 = vmul.f32 0.5, %v1370_v18  ;;  %vm2996_vm7 = vmor %vm1384_vm6, %vm1385_vm4 }
 0x175   : > { %1608 = vxpose.xlu2.b32.start [1/16] (narrow) %v1560_v31, 32  ;;  %v1561_v31 = vadd.f32 %v2674_v44, %v1528_v7  ;;  %v1362_v7 = vsub.f32 1.5, %v1361_v34  ;;  %v1037_v34 = vmul.f32 %v2811_v21, %v2811_v21  ;;  %1889 = vrsqrt.f32 %v2824_v61 }
 0x176   : > { %v2757_v8 = vpop.xlane.xlu1 %927  ;;  %v2759_v59 = vpop.xlane.xlu0 %770  ;;  %1891 = vrsqrt.f32 %v2847_v41  ;;  %vm1394_vm12 = vweird.f32 %v2824_v61 }
 0x177   : > { %v976_v63 = vpop.xlane.xlu2 %975  ;;  %v2852_v12 = vpop.eup %1887  ;;  %v1363_v58 = vmul.f32 %v2702_v55, %v1362_v7  ;;  %v1069_v26 = vsub.f32 %v1005_v48, %v1037_v34  ;;  %v1372_v7 = vsub.f32 1.5, %v1371_v3  ;;  %v1006_v46 = vmul.f32 0.03125, %v2757_v8 }
 0x178   : > { %v1022_v32 = vmul.f32 0.03125, %v976_v63  ;;  %v1209_v53 = vmul.f32 %v2852_v12, %v2775_v4  ;;  %vm1215_vm5 = vweird.f32 %v2852_v12 }
 0x179   : > { %v2906_v34 = vadd.f32 1e-05, %v1069_v26  ;;  %vm3017_vm8 = vmor %vm1214_vm3, %vm1215_vm5 }
 0x17a   : > { %v1086_v13 = vsub.f32 %v1022_v32, %v1054_v35  ;;  %v1530_v35 = vmul.f32 %v2649_v17, %v1497_v43  ;;  %v1367_v32 = vsel %vm2877_vm13, %v2702_v55, %v1363_v58  ;;  %v1210_v48 = vmul.f32 %v2852_v12, %v1209_v53 }
 0x17b   : > { %v2901_v63 = vpop.eup %1889  ;;  %v1038_v55 = vmul.f32 %v2897_v60, %v2897_v60  ;;  %v1498_v37 = vmul.f32 %v1367_v32, %v1114_v16  ;;  %v1514_v43 = vmul.f32 %v2649_v17, %v1481_v50  ;;  %v1373_v58 = vmul.f32 %v2761_v2, %v1372_v7 }
 0x17c   : > { %v2885_v18 = vadd.f32 1e-05, %v1086_v13  ;;  %v1389_v16 = vmul.f32 %v2901_v63, %v2824_v61  ;;  %v1100_v50 = vsub.f32 %v2319_v22, %v2751_v45  ;;  %vm1395_vm11 = vweird.f32 %v2901_v63  ;;  %v3600_v22 = vld [vmem:[#allocation9_spill] sm:$0xff] }
 0x17d   : > { %1609 = vxpose.xlu2.b32.cont [2/16] (narrow) %v1561_v31, 32  ;;  %v1379_v31 = vmul.f32 %v2837_v42, %v2753_v6  ;;  %v1070_v26 = vsub.f32 %v1006_v46, %v1038_v55  ;;  %v1531_v27 = vmul.f32 %v2649_v17, %v1498_v37  ;;  %v1377_v32 = vsel %vm2933_vm2, %v2761_v2, %v1373_v58  ;;  %vm3058_vm13 = vmor %vm1394_vm12, %vm1395_vm11 }
 0x17e   : > { %v819_v62 = vpop.xlane.xlu1 %818  ;;  %v979_v20 = vpop.xlane.xlu0 %978  ;;  %1893 = vrsqrt.f32 %v2885_v18  ;;  %v2958_v55 = vmul.f32 0.03125, %v2759_v59  ;;  %v3585_v2 = vsub.f32 %v2288_v49, %v2608_v52  ;;  %v1499_v49 = vmul.f32 %v1377_v32, %v1115_v38  ;;  %v3586_v38 = vld [vmem:[#allocation5_spill] sm:$0xff] }
 0x17f   : > { %v2828_v5 = vpop.xlane.xlu2 %930  ;;  %v2865_v25 = vmul.f32 0.03125, %v819_v62  ;;  %v1380_v62 = vmul.f32 %v2837_v42, %v1379_v31  ;;  %v1023_v54 = vmul.f32 0.03125, %v979_v20  ;;  %v2912_v20 = vpop.eup %1891  ;;  %v1563_v31 = vadd.f32 %v2674_v44, %v1530_v35 }
 0x180   : > { %1895 = vrsqrt.f32 %v2906_v34  ;;  %v1219_v53 = vmul.f32 %v2912_v20, %v2847_v41  ;;  %v1546_v35 = vadd.f32 %v2674_v44, %v1513_v47  ;;  %v2961_v47 = vadd.f32 %v2674_v44, %v1514_v43 }
 0x181   : > { %v1381_v8 = vmul.f32 0.5, %v1380_v62  ;;  %v1482_v46 = vmul.f32 %v1207_v36, %v3585_v2  ;;  %v2968_v58 = vadd.f32 1e-05, %v1070_v26  ;;  %v1564_v3 = vadd.f32 %v2674_v44, %v1531_v27 }
 0x182   : > { %v1220_v37 = vmul.f32 %v2912_v20, %v1219_v53  ;;  %v1039_v59 = vmul.f32 %v2958_v55, %v2958_v55  ;;  %v1007_v43 = vmul.f32 0.03125, %v2828_v5  ;;  %v1116_v10 = vsub.f32 %v3586_v38, %v2669_v15  ;;  %v3591_v38 = vld [vmem:[#allocation7_spill] sm:$0xff] }
 0x183   : > { %v1382_v62 = vsub.f32 1.5, %v1381_v8  ;;  %v1515_v5 = vmul.f32 %v2649_v17, %v1482_v46  ;;  %v1532_v32 = vmul.f32 %v2649_v17, %v1499_v49  ;;  %vm1225_vm10 = vweird.f32 %v2912_v20 }
 0x184   : > { %v2955_v0 = vpop.eup %1893  ;;  %v1221_v9 = vmul.f32 0.5, %v1220_v37  ;;  %v1071_v53 = vsub.f32 %v1007_v43, %v1039_v59  ;;  %vm3079_vm14 = vmor %vm1224_vm9, %vm1225_vm10  ;;  %vm1404_vm1 = vweird.f32 %v2885_v18  ;;  %vm1234_vm2 = vweird.f32 %v2906_v34 }
 0x185   : > { %1610 = vxpose.xlu2.b32.cont [3/16] (narrow) %v1562_v56, 32  ;;  %1576 = vxpose.xlu1.b32.start [1/16] (narrow) %v2711_v33, 32  ;;  %v1055_v33 = vmul.f32 %v2865_v25, %v2865_v25  ;;  %v1211_v56 = vmul.f32 0.5, %v1210_v48  ;;  %v1383_v52 = vmul.f32 %v2837_v42, %v1382_v62  ;;  %v3026_v2 = vadd.f32 %v2674_v44, %v1515_v5 }
 0x186   : > { %v2887_v28 = vpop.xlane.xlu0 %933  ;;  %v2889_v39 = vpop.xlane.xlu1 %773  ;;  %vm1405_vm15 = vweird.f32 %v2955_v0  ;;  %v1102_v45 = vsub.f32 %v3600_v22, %v2897_v60  ;;  %vm1244_vm6 = vweird.f32 %v2968_v58 }
 0x187   : > { %v822_v40 = vpop.xlane.xlu2 %821  ;;  %v1087_v13 = vsub.f32 %v1023_v54, %v1055_v33  ;;  %v1212_v48 = vsub.f32 1.5, %v1211_v56  ;;  %v2971_v8 = vpop.eup %1895  ;;  %v1387_v62 = vsel %vm2996_vm7, %v2837_v42, %v1383_v52  ;;  %v1222_v42 = vsub.f32 1.5, %v1221_v9  ;;  %vm3121_vm3 = vmor %vm1404_vm1, %vm1405_vm15 }
 0x188   : > { %v2928_v11 = vmul.f32 0.03125, %v822_v40  ;;  %v1229_v30 = vmul.f32 %v2971_v8, %v2906_v34  ;;  %v1500_v59 = vmul.f32 %v1387_v62, %v1116_v10  ;;  %v1565_v52 = vadd.f32 %v2674_v44, %v1532_v32 }
 0x189   : > { %v2951_v33 = vadd.f32 1e-05, %v1087_v13  ;;  %v1213_v36 = vmul.f32 %v2852_v12, %v1212_v48  ;;  %vm1235_vm0 = vweird.f32 %v2971_v8 }
 0x18a   : > { %v1056_v51 = vmul.f32 %v2928_v11, %v2928_v11  ;;  %v1230_v4 = vmul.f32 %v2971_v8, %v1229_v30  ;;  %v1533_v61 = vmul.f32 %v2649_v17, %v1500_v59  ;;  %vm3140_vm4 = vmor %vm1234_vm2, %vm1235_vm0 }
 0x18b   : > { %1897 = vrsqrt.f32 %v2951_v33  ;;  %v1217_v37 = vsel %vm3017_vm8, %v2852_v12, %v1213_v36  ;;  %v1008_v12 = vmul.f32 0.03125, %v2887_v28  ;;  %v1223_v36 = vmul.f32 %v2912_v20, %v1222_v42 }
 0x18c   : > { %1899 = vrsqrt.f32 %v2968_v58  ;;  %v1483_v5 = vmul.f32 %v1217_v37, %v1099_v57  ;;  %v1231_v9 = vmul.f32 0.5, %v1230_v4  ;;  %v1117_v28 = vsub.f32 %v3591_v38, %v2744_v23 }
 0x18d   : > { %1611 = vxpose.xlu2.b32.cont [4/16] (narrow) %v1563_v31, 32  ;;  %1577 = vxpose.xlu1.b32.cont [2/16] (narrow) %v2832_v29, 32  ;;  %v1390_v29 = vmul.f32 %v2901_v63, %v1389_v16  ;;  %v1399_v31 = vmul.f32 %v2955_v0, %v2885_v18  ;;  %v1227_v41 = vsel %vm3079_vm14, %v2912_v20, %v1223_v36  ;;  %vm1414_vm7 = vweird.f32 %v2951_v33 }
 0x18e   : > { %v825_v1 = vpop.xlane.xlu0 %824  ;;  %v982_v7 = vpop.xlane.xlu1 %981  ;;  %v1232_v42 = vsub.f32 1.5, %v1231_v9  ;;  %v1484_v36 = vmul.f32 %v1227_v41, %v1100_v50  ;;  %v3597_v9 = vld [vmem:[#allocation8_spill] sm:$0xff] }
 0x18f   : > { %v1024_v54 = vmul.f32 0.03125, %v982_v7  ;;  %v2953_v40 = vpop.xlane.xlu2 %776  ;;  %v1391_v13 = vmul.f32 0.5, %v1390_v29  ;;  %v2985_v56 = vmul.f32 0.03125, %v825_v1  ;;  %v1118_v38 = vsub.f32 %v3597_v9, %v2814_v19 }
 0x190   : > { %v3095_v37 = vmul.f32 0.03125, %v2953_v40 }
 0x191   : > { %v1088_v16 = vsub.f32 %v1024_v54, %v1056_v51  ;;  %v1057_v26 = vmul.f32 %v2985_v56, %v2985_v56  ;;  %v1392_v7 = vsub.f32 1.5, %v1391_v13  ;;  %v3023_v54 = vmul.f32 0.03125, %v2889_v39  ;;  %v3028_v46 = vpop.eup %1897 }
 0x192   : > { %v3038_v43 = vpop.eup %1899  ;;  %v1409_v13 = vmul.f32 %v3028_v46, %v2951_v33  ;;  %v1041_v40 = vmul.f32 %v3095_v37, %v3095_v37  ;;  %vm1415_vm5 = vweird.f32 %v3028_v46 }
 0x193   : > { %v3002_v27 = vadd.f32 1e-05, %v1088_v16  ;;  %v1393_v16 = vmul.f32 %v2901_v63, %v1392_v7  ;;  %v1239_v14 = vmul.f32 %v3038_v43, %v2968_v58  ;;  %vm1245_vm8 = vweird.f32 %v3038_v43  ;;  %vm3185_vm9 = vmor %vm1414_vm7, %vm1415_vm5 }
 0x194   : > { %v1410_v62 = vmul.f32 %v3028_v46, %v1409_v13  ;;  %vm3211_vm10 = vmor %vm1244_vm6, %vm1245_vm8 }
 0x195   : > { %1612 = vxpose.xlu2.b32.cont [5/16] (narrow) %v1564_v3, 32  ;;  %1578 = vxpose.xlu1.b32.cont [3/16] (narrow) %v1546_v35, 32  ;;  %v1400_v35 = vmul.f32 %v2955_v0, %v1399_v31  ;;  %v3035_v3 = vadd.f32 1e-05, %v1071_v53  ;;  %1901 = vrsqrt.f32 %v3002_v27  ;;  %v1040_v31 = vmul.f32 %v3023_v54, %v3023_v54 }
 0x196   : > { %v3004_v51 = vpop.xlane.xlu1 %936  ;;  %v3006_v1 = vpop.xlane.xlu0 %779  ;;  %v1397_v23 = vsel %vm3058_vm13, %v2901_v63, %v1393_v16  ;;  %v1240_v4 = vmul.f32 %v3038_v43, %v1239_v14  ;;  %vm1424_vm13 = vweird.f32 %v3002_v27 }
 0x197   : > { %v985_v15 = vpop.xlane.xlu2 %984  ;;  %v1401_v49 = vmul.f32 0.5, %v1400_v35  ;;  %1903 = vrsqrt.f32 %v3035_v3  ;;  %v1072_v29 = vsub.f32 %v1008_v12, %v1040_v31  ;;  %v1501_v59 = vmul.f32 %v1397_v23, %v1117_v28  ;;  %v3603_v35 = vld [vmem:[#allocation10_spill] sm:$0xff] }
 0x198   : > { %v1025_v48 = vmul.f32 0.03125, %v985_v15  ;;  %v3596_v15 = vld [vmem:[#allocation6_spill] sm:$0xff]  ;;  %v1411_v12 = vmul.f32 0.5, %v1410_v62  ;;  %v1009_v31 = vmul.f32 0.03125, %v3004_v51  ;;  %v1241_v28 = vmul.f32 0.5, %v1240_v4 }
 0x199   : > { %v1402_v6 = vsub.f32 1.5, %v1401_v49  ;;  %v1101_v32 = vsub.f32 %v3596_v15, %v2811_v21  ;;  %v3104_v20 = vadd.f32 1e-05, %v1072_v29  ;;  %v1517_v29 = vmul.f32 %v2649_v17, %v1484_v36 }
 0x19a   : > { %v1089_v39 = vsub.f32 %v1025_v48, %v1057_v26  ;;  %v1516_v48 = vmul.f32 %v2649_v17, %v1483_v5  ;;  %v1233_v5 = vmul.f32 %v2971_v8, %v1232_v42  ;;  %v1242_v42 = vsub.f32 1.5, %v1241_v28 }
 0x19b   : > { %v3073_v7 = vpop.eup %1901  ;;  %v1403_v16 = vmul.f32 %v2955_v0, %v1402_v6  ;;  %v1412_v6 = vsub.f32 1.5, %v1411_v12  ;;  %v1550_v33 = vadd.f32 %v2674_v44, %v1517_v29  ;;  %vm1254_vm11 = vweird.f32 %v3035_v3 }
 0x19c   : > { %v3053_v30 = vadd.f32 1e-05, %v1089_v39  ;;  %v1566_v39 = vadd.f32 %v2674_v44, %v1533_v61  ;;  %v1419_v49 = vmul.f32 %v3073_v7, %v3002_v27  ;;  %v1237_v23 = vsel %vm3140_vm4, %v2971_v8, %v1233_v5 }
 0x19d   : > { %1613 = vxpose.xlu2.b32.cont [6/16] (narrow) %v1565_v52, 32  ;;  %1579 = vxpose.xlu1.b32.cont [4/16] (narrow) %v2961_v47, 32  ;;  %v3102_v13 = vpop.eup %1903  ;;  %v1549_v62 = vadd.f32 %v2674_v44, %v1516_v48  ;;  %v1413_v48 = vmul.f32 %v3028_v46, %v1412_v6  ;;  %v1243_v15 = vmul.f32 %v3038_v43, %v1242_v42  ;;  %vm1425_vm12 = vweird.f32 %v3073_v7 }
 0x19e   : > { %v828_v24 = vpop.xlane.xlu1 %827  ;;  %v988_v57 = vpop.xlane.xlu0 %987  ;;  %1905 = vrsqrt.f32 %v3053_v30  ;;  %v1420_v34 = vmul.f32 %v3073_v7, %v1419_v49  ;;  %v1249_v61 = vmul.f32 %v3102_v13, %v3035_v3  ;;  %vm3234_vm14 = vmor %vm1424_vm13, %vm1425_vm12  ;;  %vm1255_vm15 = vweird.f32 %v3102_v13 }
 0x19f   : > { %v3066_v53 = vmul.f32 0.03125, %v828_v24  ;;  %v3068_v47 = vpop.xlane.xlu2 %939  ;;  %v1026_v26 = vmul.f32 0.03125, %v988_v57  ;;  %v1407_v24 = vsel %vm3121_vm3, %v2955_v0, %v1403_v16  ;;  %1907 = vrsqrt.f32 %v3104_v20  ;;  %vm3273_vm1 = vmor %vm1254_vm11, %vm1255_vm15 }
 0x1a0   : > { %v1103_v0 = vsub.f32 %v3603_v35, %v2958_v55  ;;  %v1502_v4 = vmul.f32 %v1407_v24, %v1118_v38  ;;  %v1250_v16 = vmul.f32 %v3102_v13, %v1249_v61  ;;  %v1247_v58 = vsel %vm3211_vm10, %v3038_v43, %v1243_v15 }
 0x1a1   : > { %v1058_v63 = vmul.f32 %v3066_v53, %v3066_v53  ;;  %vm1434_vm2 = vweird.f32 %v3053_v30  ;;  %vm1264_vm4 = vweird.f32 %v3104_v20 }
 0x1a2   : > { %v1535_v38 = vmul.f32 %v2649_v17, %v1502_v4 }
 0x1a3   : > { %v1090_v52 = vsub.f32 %v1026_v26, %v1058_v63  ;;  %v1073_v26 = vsub.f32 %v1009_v31, %v1041_v40  ;;  %v1485_v31 = vmul.f32 %v1237_v23, %v1101_v32  ;;  %v1251_v32 = vmul.f32 0.5, %v1250_v16 }
 0x1a4   : > { %v3128_v14 = vpop.eup %1905 }
 0x1a5   : > { %1614 = vxpose.xlu2.b32.cont [7/16] (narrow) %v1566_v39, 32  ;;  %1580 = vxpose.xlu1.b32.cont [5/16] (narrow) %v3026_v2, 32  ;;  %v1534_v2 = vmul.f32 %v2649_v17, %v1501_v59  ;;  %v3133_v19 = vadd.f32 1e-05, %v1090_v52  ;;  %v1429_v63 = vmul.f32 %v3128_v14, %v3053_v30  ;;  %v1421_v39 = vmul.f32 0.5, %v1420_v34  ;;  %v3174_v40 = vpop.eup %1907 }
 0x1a6   : > { %v3125_v18 = vpop.xlane.xlu0 %942  ;;  %v783_v10 = vpop.xlane.xlu1 %782  ;;  %v3158_v59 = vmul.f32 0.03125, %v3006_v1  ;;  %v3166_v49 = vadd.f32 1e-05, %v1073_v26  ;;  %v1010_v1 = vmul.f32 0.03125, %v3068_v47  ;;  %v1259_v57 = vmul.f32 %v3174_v40, %v3104_v20 }
 0x1a7   : > { %v831_v50 = vpop.xlane.xlu2 %830  ;;  %v1567_v41 = vadd.f32 %v2674_v44, %v1534_v2  ;;  %1909 = vrsqrt.f32 %v3133_v19  ;;  %v1430_v5 = vmul.f32 %v3128_v14, %v1429_v63  ;;  %v1422_v28 = vsub.f32 1.5, %v1421_v39 }
 0x1a8   : > { %v3161_v8 = vmul.f32 0.03125, %v831_v50  ;;  %v1042_v52 = vmul.f32 %v3158_v59, %v3158_v59  ;;  %1911 = vrsqrt.f32 %v3166_v49  ;;  %v1417_v2 = vsel %vm3185_vm9, %v3028_v46, %v1413_v48  ;;  %v3606_v50 = vld [vmem:[#allocation11_spill] sm:$0xff] }
 0x1a9   : > { %v1119_v24 = vsub.f32 %v3606_v50, %v2865_v25  ;;  %v1431_v26 = vmul.f32 0.5, %v1430_v5  ;;  %v3203_v23 = vmul.f32 0.03125, %v783_v10  ;;  %v1518_v29 = vmul.f32 %v2649_v17, %v1485_v31  ;;  %v3612_v50 = vld [vmem:[#allocation12_spill] sm:$0xff] }
 0x1aa   : > { %v1059_v12 = vmul.f32 %v3161_v8, %v3161_v8  ;;  %v1074_v61 = vsub.f32 %v1010_v1, %v1042_v52  ;;  %v1423_v25 = vmul.f32 %v3073_v7, %v1422_v28  ;;  %v1252_v63 = vsub.f32 1.5, %v1251_v32 }
 0x1ab   : > { %v1503_v42 = vmul.f32 %v1417_v2, %v1119_v24  ;;  %v1260_v39 = vmul.f32 %v3174_v40, %v1259_v57  ;;  %v1432_v1 = vsub.f32 1.5, %v1431_v26  ;;  %v1043_v43 = vmul.f32 %v3203_v23, %v3203_v23 }
 0x1ac   : > { %v3229_v16 = vadd.f32 1e-05, %v1074_v61  ;;  %v1427_v28 = vsel %vm3234_vm14, %v3073_v7, %v1423_v25  ;;  %vm1435_vm0 = vweird.f32 %v3128_v14  ;;  %v1104_v24 = vsub.f32 %v3612_v50, %v3023_v54 }
 0x1ad   : > { %1615 = vxpose.xlu2.b32.cont [8/16] (narrow) %v1567_v41, 32  ;;  %1581 = vxpose.xlu1.b32.cont [6/16] (narrow) %v1549_v62, 32  ;;  %v3197_v34 = vpop.eup %1909  ;;  %v1568_v62 = vadd.f32 %v2674_v44, %v1535_v38  ;;  %v1536_v47 = vmul.f32 %v2649_v17, %v1503_v42  ;;  %v1261_v32 = vmul.f32 0.5, %v1260_v39  ;;  %v1433_v7 = vmul.f32 %v3128_v14, %v1432_v1  ;;  %vm3285_vm3 = vmor %vm1434_vm2, %vm1435_vm0 }
 0x1ae   : > { %v834_v36 = vpop.xlane.xlu0 %833  ;;  %v991_v9 = vpop.xlane.xlu1 %990  ;;  %v1439_v41 = vmul.f32 %v3197_v34, %v3133_v19  ;;  %v1551_v61 = vadd.f32 %v2674_v44, %v1518_v29  ;;  %vm1265_vm5 = vweird.f32 %v3174_v40  ;;  %vm1445_vm7 = vweird.f32 %v3197_v34 }
 0x1af   : > { %v1027_v51 = vmul.f32 0.03125, %v991_v9  ;;  %v3189_v21 = vpop.xlane.xlu2 %785  ;;  %v3222_v4 = vmul.f32 0.03125, %v834_v36  ;;  %v3232_v48 = vpop.eup %1911  ;;  %v3611_v36 = vld [vmem:[#allocation13_spill] sm:$0xff]  ;;  %v1569_v57 = vadd.f32 %v2674_v44, %v1536_v47  ;;  %v1262_v42 = vsub.f32 1.5, %v1261_v32  ;;  %vm3326_vm6 = vmor %vm1264_vm4, %vm1265_vm5 }
 0x1b0   : > { %v1120_v9 = vsub.f32 %v3611_v36, %v2928_v11  ;;  %v1269_v11 = vmul.f32 %v3232_v48, %v3166_v49  ;;  %v3290_v3 = vmul.f32 0.03125, %v3189_v21  ;;  %v1437_v1 = vsel %vm3285_vm3, %v3128_v14, %v1433_v7  ;;  %v3617_v36 = vld [vmem:[#allocation14_spill] sm:$0xff] }
 0x1b1   : > { %v1091_v6 = vsub.f32 %v1027_v51, %v1059_v12  ;;  %v1011_v12 = vmul.f32 0.03125, %v3125_v18  ;;  %v1060_v27 = vmul.f32 %v3222_v4, %v3222_v4  ;;  %v1486_v18 = vmul.f32 %v1247_v58, %v1102_v45 }
 0x1b2   : > { %v1253_v51 = vmul.f32 %v3102_v13, %v1252_v63  ;;  %v1504_v22 = vmul.f32 %v1427_v28, %v1120_v9  ;;  %v1270_v29 = vmul.f32 %v3232_v48, %v1269_v11  ;;  %v1121_v9 = vsub.f32 %v3617_v36, %v2985_v56 }
 0x1b3   : > { %v3218_v10 = vadd.f32 1e-05, %v1091_v6  ;;  %v1075_v2 = vsub.f32 %v1011_v12, %v1043_v43  ;;  %v1519_v6 = vmul.f32 %v2649_v17, %v1486_v18  ;;  %v1044_v12 = vmul.f32 %v3290_v3, %v3290_v3 }
 0x1b4   : > { %v1257_v30 = vsel %vm3273_vm1, %v3102_v13, %v1253_v51  ;;  %v1537_v52 = vmul.f32 %v2649_v17, %v1504_v22  ;;  %v1263_v14 = vmul.f32 %v3174_v40, %v1262_v42  ;;  %v1271_v18 = vmul.f32 0.5, %v1270_v29 }
 0x1b5   : > { %1913 = vrsqrt.f32 %v3218_v10  ;;  %1616 = vxpose.xlu2.b32.cont [9/16] (narrow) %v1568_v62, 32  ;;  %1582 = vxpose.xlu1.b32.cont [7/16] (narrow) %v1550_v33, 32  ;;  %v1440_v33 = vmul.f32 %v3197_v34, %v1439_v41  ;;  %v3295_v41 = vadd.f32 1e-05, %v1075_v2  ;;  %v1487_v28 = vmul.f32 %v1257_v30, %v1103_v0 }
 0x1b6   : > { %v946_v31 = vpop.xlane.xlu1 %945  ;;  %v3243_v5 = vpop.xlane.xlu0 %788  ;;  %1915 = vrsqrt.f32 %v3229_v16  ;;  %v1505_v51 = vmul.f32 %v1437_v1, %v1121_v9  ;;  %v1570_v55 = vadd.f32 %v2674_v44, %v1537_v52  ;;  %v1552_v35 = vadd.f32 %v2674_v44, %v1519_v6 }
 0x1b7   : > { %v994_v38 = vpop.xlane.xlu2 %993  ;;  %v1441_v62 = vmul.f32 0.5, %v1440_v33  ;;  %v1012_v43 = vmul.f32 0.03125, %v946_v31  ;;  %v1520_v2 = vmul.f32 %v2649_v17, %v1487_v28  ;;  %v1272_v6 = vsub.f32 1.5, %v1271_v18  ;;  %v3627_v18 = vld [vmem:[#allocation15_spill] sm:$0xff] }
 0x1b8   : > { %v1028_v15 = vmul.f32 0.03125, %v994_v38  ;;  %vm1444_vm8 = vweird.f32 %v3133_v19  ;;  %vm1275_vm10 = vweird.f32 %v3232_v48  ;;  %vm1274_vm12 = vweird.f32 %v3166_v49 }
 0x1b9   : > { %v1442_v38 = vsub.f32 1.5, %v1441_v62  ;;  %v1076_v33 = vsub.f32 %v1012_v43, %v1044_v12  ;;  %v1538_v62 = vmul.f32 %v2649_v17, %v1505_v51  ;;  %vm3346_vm9 = vmor %vm1444_vm8, %vm1445_vm7  ;;  %v1553_v52 = vadd.f32 %v2674_v44, %v1520_v2 }
 0x1ba   : > { %v1092_v60 = vsub.f32 %v1028_v15, %v1060_v27  ;;  %v1273_v1 = vmul.f32 %v3232_v48, %v1272_v6  ;;  %vm3378_vm13 = vmor %vm1274_vm12, %vm1275_vm10  ;;  %vm1454_vm14 = vweird.f32 %v3218_v10  ;;  %vm1284_vm2 = vweird.f32 %v3229_v16 }
 0x1bb   : > { %v3262_v45 = vpop.eup %1913  ;;  %v1443_v32 = vmul.f32 %v3197_v34, %v1442_v38  ;;  %v1571_v43 = vadd.f32 %v2674_v44, %v1538_v62  ;;  %v3388_v38 = vld [vmem:[%s3515_s2 + $0x1] ss:$0 sm:$0xff]  ;;  %vm1294_vm8 = vweird.f32 %v3295_v41  ;;  %v3633_v44 = vld [vmem:[#allocation18_spill] sm:$0xff] }
 0x1bc   : > { %v1449_v46 = vmul.f32 %v3262_v45, %v3218_v10  ;;  %v3280_v25 = vadd.f32 1e-05, %v1092_v60  ;;  %v3302_v21 = vpop.eup %1915  ;;  %v1267_v60 = vsel %vm3326_vm6, %v3174_v40, %v1263_v14  ;;  %v3350_v40 = vadd.f32 1e-05, %v1076_v33 }
 0x1bd   : > { %1617 = vxpose.xlu2.b32.cont [10/16] (narrow) %v1569_v57, 32  ;;  %1583 = vxpose.xlu1.b32.cont [8/16] (narrow) %v1551_v61, 32  ;;  %v1279_v56 = vmul.f32 %v3302_v21, %v3229_v16  ;;  %v3339_v57 = vmul.f32 0.03125, %v3243_v5  ;;  %v1447_v17 = vsel %vm3346_vm9, %v3197_v34, %v1443_v32  ;;  %v1488_v19 = vmul.f32 %v1267_v60, %v1104_v24 }
 0x1be   : > { %1917 = vrsqrt.f32 %v3280_v25  ;;  %v837_v58 = vpop.xlane.xlu1 %836  ;;  %v997_v39 = vpop.xlane.xlu0 %996  ;;  %v1450_v47 = vmul.f32 %v3262_v45, %v1449_v46  ;;  %vm1455_vm11 = vweird.f32 %v3262_v45  ;;  %vm1285_vm0 = vweird.f32 %v3302_v21 }
 0x1bf   : > { %v3306_v27 = vmul.f32 0.03125, %v837_v58  ;;  %v1029_v13 = vmul.f32 0.03125, %v997_v39  ;;  %1919 = vrsqrt.f32 %v3295_v41  ;;  %v949_v7 = vpop.xlane.xlu2 %948  ;;  %v1280_v26 = vmul.f32 %v3302_v21, %v1279_v56  ;;  %v3622_v58 = vld [vmem:[#allocation17_spill] sm:$0xff]  ;;  %vm3392_vm15 = vmor %vm1454_vm14, %vm1455_vm11 }
 0x1c0   : > { %v1451_v11 = vmul.f32 0.5, %v1450_v47  ;;  %v1045_v5 = vmul.f32 %v3339_v57, %v3339_v57  ;;  %v1013_v42 = vmul.f32 0.03125, %v949_v7  ;;  %v1122_v39 = vsub.f32 %v3622_v58, %v3066_v53  ;;  %vm3429_vm3 = vmor %vm1284_vm2, %vm1285_vm0 }
 0x1c1   : > { %v1061_v31 = vmul.f32 %v3306_v27, %v3306_v27  ;;  %v1281_v12 = vmul.f32 0.5, %v1280_v26  ;;  %v1521_v47 = vmul.f32 %v3388_v38, %v1488_v19  ;;  %v1105_v56 = vsub.f32 %v3627_v18, %v3095_v37  ;;  %v3417_v37 = vld [vmem:[%s3515_s2 + $0x2] ss:$0 sm:$0xff] }
 0x1c2   : > { %v1452_v63 = vsub.f32 1.5, %v1451_v11  ;;  %v1077_v34 = vsub.f32 %v1013_v42, %v1045_v5  ;;  %v1506_v54 = vmul.f32 %v1447_v17, %v1122_v39  ;;  %vm1464_vm4 = vweird.f32 %v3280_v25  ;;  %v3631_v17 = vld [vmem:[#allocation16_spill] sm:$0xff]  ;;  %v3635_v18 = vld [vmem:[#allocation21_spill] sm:$0xff] }
 0x1c3   : > { %v1093_v15 = vsub.f32 %v1029_v13, %v1061_v31  ;;  %v1282_v36 = vsub.f32 1.5, %v1281_v12  ;;  %v1277_v31 = vsel %vm3378_vm13, %v3232_v48, %v1273_v1  ;;  %v1554_v48 = vadd.f32 %v3417_v37, %v1521_v47 }
 0x1c4   : > { %v3324_v0 = vpop.eup %1917  ;;  %v1453_v50 = vmul.f32 %v3262_v45, %v1452_v63  ;;  %v3396_v14 = vadd.f32 1e-05, %v1077_v34  ;;  %v1539_v10 = vmul.f32 %v3388_v38, %v1506_v54  ;;  %v1489_v11 = vmul.f32 %v1277_v31, %v1105_v56 }
 0x1c5   : > { %v1459_v22 = vmul.f32 %v3324_v0, %v3280_v25  ;;  %v3341_v61 = vadd.f32 1e-05, %v1093_v15  ;;  %1618 = vxpose.xlu2.b32.cont [11/16] (narrow) %v1570_v55, 32  ;;  %1584 = vxpose.xlu1.b32.cont [9/16] (narrow) %v1552_v35, 32  ;;  %v3355_v29 = vpop.eup %1919  ;;  %v3628_v35 = vld [vmem:[#allocation19_spill] sm:$0xff]  ;;  %v1283_v32 = vmul.f32 %v3302_v21, %v1282_v36  ;;  %vm1465_vm1 = vweird.f32 %v3324_v0  ;;  %v3632_v25 = vld [vmem:[#allocation20_spill] sm:$0xff] }
 0x1c6   : > { %v1289_v13 = vmul.f32 %v3355_v29, %v3295_v41  ;;  %v1457_v15 = vsel %vm3392_vm15, %v3262_v45, %v1453_v50  ;;  %v1123_v20 = vsub.f32 %v3628_v35, %v3161_v8  ;;  %v1572_v45 = vadd.f32 %v3417_v37, %v1539_v10  ;;  %vm1466_vm5 = vmor %vm1464_vm4, %vm1465_vm1  ;;  %v3634_v41 = vld [vmem:[#allocation23_spill] sm:$0xff] }
 0x1c7   : > { %1921 = vrsqrt.f32 %v3341_v61  ;;  %v1460_v30 = vmul.f32 %v3324_v0, %v1459_v22  ;;  %v1522_v26 = vmul.f32 %v3388_v38, %v1489_v11  ;;  %v1287_v63 = vsel %vm3429_vm3, %v3302_v21, %v1283_v32 }
 0x1c8   : > { %1923 = vrsqrt.f32 %v3350_v40  ;;  %v1290_v49 = vmul.f32 %v3355_v29, %v1289_v13  ;;  %v1507_v2 = vmul.f32 %v1457_v15, %v1123_v20  ;;  %v1106_v19 = vsub.f32 %v3631_v17, %v3158_v59 }
 0x1c9   : > { %v1461_v53 = vmul.f32 0.5, %v1460_v30  ;;  %1925 = vrsqrt.f32 %v3396_v14  ;;  %v1124_v58 = vsub.f32 %v3632_v25, %v3222_v4  ;;  %vm1295_vm6 = vweird.f32 %v3355_v29 }
 0x1ca   : > { %v1291_v7 = vmul.f32 0.5, %v1290_v49  ;;  %v1540_v46 = vmul.f32 %v3388_v38, %v1507_v2  ;;  %v1555_v39 = vadd.f32 %v3417_v37, %v1522_v26  ;;  %v1490_v12 = vmul.f32 %v1287_v63, %v1106_v19  ;;  %vm1296_vm9 = vmor %vm1294_vm8, %vm1295_vm6 }
 0x1cb   : > { %v1462_v51 = vsub.f32 1.5, %v1461_v53  ;;  %vm1474_vm10 = vweird.f32 %v3341_v61  ;;  %v1107_v36 = vsub.f32 %v3633_v44, %v3203_v23  ;;  %vm1304_vm13 = vweird.f32 %v3350_v40 }
 0x1cc   : > { %v1292_v62 = vsub.f32 1.5, %v1291_v7  ;;  %v1573_v1 = vadd.f32 %v3417_v37, %v1540_v46  ;;  %v1523_v4 = vmul.f32 %v3388_v38, %v1490_v12  ;;  %v1108_v56 = vsub.f32 %v3635_v18, %v3290_v3 }
 0x1cd   : > { %v3375_v24 = vpop.eup %1921  ;;  %1619 = vxpose.xlu2.b32.cont [12/16] (narrow) %v1571_v43, 32  ;;  %1585 = vxpose.xlu1.b32.cont [10/16] (narrow) %v1553_v52, 32  ;;  %v1463_v60 = vmul.f32 %v3324_v0, %v1462_v51  ;;  %vm1314_vm15 = vweird.f32 %v3396_v14 }
 0x1ce   : > { %v1469_v9 = vmul.f32 %v3375_v24, %v3341_v61  ;;  %v3408_v55 = vpop.eup %1923  ;;  %v1293_v52 = vmul.f32 %v3355_v29, %v1292_v62  ;;  %vm1475_vm7 = vweird.f32 %v3375_v24  ;;  %v1556_v49 = vadd.f32 %v3417_v37, %v1523_v4 }
 0x1cf   : > { %v1299_v8 = vmul.f32 %v3408_v55, %v3350_v40  ;;  %v1467_v16 = vsel %vm1466_vm5, %v3324_v0, %v1463_v60  ;;  %v1926_v30 = vpop.eup %1925  ;;  %vm1476_vm11 = vmor %vm1474_vm10, %vm1475_vm7  ;;  %vm1305_vm12 = vweird.f32 %v3408_v55 }
 0x1d0   : > { %v1470_v33 = vmul.f32 %v3375_v24, %v1469_v9  ;;  %v1508_v0 = vmul.f32 %v1467_v16, %v1124_v58  ;;  %v1309_v21 = vmul.f32 %v1926_v30, %v3396_v14  ;;  %v1297_v34 = vsel %vm1296_vm9, %v3355_v29, %v1293_v52  ;;  %vm1306_vm14 = vmor %vm1304_vm13, %vm1305_vm12 }
 0x1d1   : > { %v1300_v5 = vmul.f32 %v3408_v55, %v1299_v8  ;;  %v1125_v9 = vsub.f32 %v3634_v41, %v3306_v27  ;;  %v1491_v47 = vmul.f32 %v1297_v34, %v1107_v36  ;;  %vm1315_vm0 = vweird.f32 %v1926_v30 }
 0x1d2   : > { %v1471_v22 = vmul.f32 0.5, %v1470_v33  ;;  %v1541_v59 = vmul.f32 %v3388_v38, %v1508_v0  ;;  %v1310_v50 = vmul.f32 %v1926_v30, %v1309_v21  ;;  %vm1316_vm1 = vmor %vm1314_vm15, %vm1315_vm0 }
 0x1d3   : > { %v1301_v43 = vmul.f32 0.5, %v1300_v5  ;;  %v1524_v27 = vmul.f32 %v3388_v38, %v1491_v47 }
 0x1d4   : > { %v1472_v42 = vsub.f32 1.5, %v1471_v22  ;;  %v1574_v61 = vadd.f32 %v3417_v37, %v1541_v59  ;;  %v1311_v29 = vmul.f32 0.5, %v1310_v50 }
 0x1d5   : > { %1620 = vxpose.xlu2.b32.cont [13/16] (narrow) %v1572_v45, 32  ;;  %1586 = vxpose.xlu1.b32.cont [11/16] (narrow) %v1554_v48, 32  ;;  %v1302_v54 = vsub.f32 1.5, %v1301_v43  ;;  %v1557_v33 = vadd.f32 %v3417_v37, %v1524_v27 }
 0x1d6   : > { %v1473_v13 = vmul.f32 %v3375_v24, %v1472_v42 }
 0x1d7   : > { %v1303_v10 = vmul.f32 %v3408_v55, %v1302_v54 }
 0x1d8   : > { %v1477_v53 = vsel %vm1476_vm11, %v3375_v24, %v1473_v13  ;;  %v1312_v24 = vsub.f32 1.5, %v1311_v29 }
 0x1d9   : > { %v1509_v28 = vmul.f32 %v1477_v53, %v1125_v9  ;;  %v1307_v31 = vsel %vm1306_vm14, %v3408_v55, %v1303_v10  ;;  %v3636_v55 = vld [vmem:[#allocation22_spill] sm:$0xff] }
 0x1da   : > { %v1492_v40 = vmul.f32 %v1307_v31, %v1108_v56  ;;  %v1313_v15 = vmul.f32 %v1926_v30, %v1312_v24  ;;  %v1109_v32 = vsub.f32 %v3636_v55, %v3339_v57 }
 0x1db   : > { %v1542_v23 = vmul.f32 %v3388_v38, %v1509_v28 }
 0x1dc   : > { %v1525_v35 = vmul.f32 %v3388_v38, %v1492_v40  ;;  %v1317_v20 = vsel %vm1316_vm1, %v1926_v30, %v1313_v15 }
 0x1dd   : > { %1621 = vxpose.xlu2.b32.cont [14/16] (narrow) %v1573_v1, 32  ;;  %1587 = vxpose.xlu1.b32.cont [12/16] (narrow) %v1555_v39, 32  ;;  %v1575_v51 = vadd.f32 %v3417_v37, %v1542_v23  ;;  %v1493_v14 = vmul.f32 %v1317_v20, %v1109_v32 }
 0x1de   : > { %v1558_v3 = vadd.f32 %v3417_v37, %v1525_v35 }
 0x1df   : > { %v1526_v48 = vmul.f32 %v3388_v38, %v1493_v14 }
 0x1e1   : > { %v1559_v11 = vadd.f32 %v3417_v37, %v1526_v48 }
 0x1e5   : > { %1622 = vxpose.xlu2.b32.cont [15/16] (narrow) %v1574_v61, 32  ;;  %1588 = vxpose.xlu1.b32.cont [13/16] (narrow) %v1556_v49, 32 }
 0x1ed   : > { %1623 = vxpose.xlu2.b32.end [16/16] (narrow) %v1575_v51, 32  ;;  %1589 = vxpose.xlu1.b32.cont [14/16] (narrow) %v1557_v33, 32 }
 0x1f5   : > { %1590 = vxpose.xlu1.b32.cont [15/16] (narrow) %v1558_v3, 32 }
 0x1fd   : > { %1591 = vxpose.xlu1.b32.end [16/16] (narrow) %v1559_v11, 32 }
 0x20e   : > { %v1624_v7 = vpop.trf.xlu2 }
 0x20f   : > { %1644 = vst [vmem:[%s166_s17 + $0x20] sm:$0xff] %v1624_v7 }
 0x216   : > { %v1625_v45 = vpop.trf.xlu2 }
 0x217   : > { %1645 = vst [vmem:[%s166_s17 + $0x28] sm:$0xff] %v1625_v45 }
 0x21e   : > { %v1626_v2 = vpop.trf.xlu2 }
 0x21f   : > { %1646 = vst [vmem:[%s166_s17 + $0x30] sm:$0xff] %v1626_v2 }
 0x226   : > { %v1627_v57 = vpop.trf.xlu2 }
 0x227   : > { %1647 = vst [vmem:[%s166_s17 + $0x38] sm:$0xff] %v1627_v57 }
 0x229   : > { %v1592_v8 = vpop.trf.xlu1 }
 0x22a   : > { %1640 = vst [vmem:[%s166_s17] sm:$0xff] %v1592_v8 }
 0x231   : > { %v1593_v60 = vpop.trf.xlu1 }
 0x232   : > { %1641 = vst [vmem:[%s166_s17 + $0x8] sm:$0xff] %v1593_v60 }
 0x239   : > { %v1594_v38 = vpop.trf.xlu1 }
 0x23a   : > { %1642 = vst [vmem:[%s166_s17 + $0x10] sm:$0xff] %v1594_v38 }
 0x241   : > { %v1595_v37 = vpop.trf.xlu1 }
 0x242   : > { %1643 = vst [vmem:[%s166_s17 + $0x18] sm:$0xff] %v1595_v37 }
 0x243   : > { %1956 = shalt.err (!%p1953_p3)
}
 0x244   : > { %s1993_s8 = smov 128   ;;  %s1994_s9 = smov 8  }
 0x245   : > { %1819 = dma.vmem_to_hbm [thread:$0]  (%p2053_p5), %s1663_s26, 1024, %s1665_s27, %s1649_s28, %s1993_s8, %s1993_s8, %s1994_s9  }
 0x246 PF: > { %p1825_p4 = scmp.ge.s32.totalorder %s1991_s15, 2  ;;  %s1679_s10 = sand.u32 1, %s1979_s12  }
 0x247   : > { %s1680_s11 = scalar_lea.sflag [#allocation3], %s1679_s10 }
 0x248   : > { %p1822_p7 = pnand %p1825_p4, %p2057_p6 }
 0x24a   : > { %p1823_p8 = pneg %p1822_p7 }
 0x24c   : > { %1974 = dma.done.wait (%p1823_p8), %s1680_s11, 1024  }
 0x24d   : > { %1976 = vsyncadd (%p1823_p8), %s1680_s11, 4294966272  ;;  %p13_p9 = scmp.ge.s32.totalorder %s2040_s18, 5   ;;  %s3637_s12 = smov %s1983_s13 }
 0x24e   : > { %s3638_s13 = smov %s1987_s14  ;;  %s3639_s14 = smov %s2051_s21 }
 0x24f   : > { %s3640_s15 = smov %s2040_s18  ;;  %15 = sbr.rel (!%p13_p9) target bundleno = 3 (0x3), region = 68 }
 0x254   :  { %1686 = vsyncpa [#allocation3], 1 }
 0x255   :  { %1688 = vsyncpa [#allocation3 + $0x1], 1 }

</bundles_post_ra>
